<compile_context>
chip_gen: v5e
topology: v5e:2x2
jax: 0.10.0
libtpu: 0.0.40
codegen_flags: <defaults>
</compile_context>

<pallas_src>
import jax
import jax.numpy as jnp
from jax.experimental import pallas as pl
from jax.experimental.pallas import tpu as pltpu

# ----------------------------- model config (small) -----------------------------
VOCAB = 128
HIDDEN = 32
NUM_HEADS = 2
HEAD_DIM = HIDDEN // NUM_HEADS
INTERMEDIATE = 64
NUM_LAYERS = 2
MAX_POS = 64
BATCH = 2
SEQ = 8

_ATTN_SCALE = 1.0 / (HEAD_DIM ** 0.5)

# ----------------------------- static slab layouts --------------------------------
W_PAD = 3 * HIDDEN                               # 96 lanes: max(3H, I, H)

# bf16 matmul-weight slab: per layer [wqkv(H rows), wo(H), wi(H), wf(I)], then pool_w(H)
_W_ROWS_PER_LAYER = HIDDEN + HIDDEN + HIDDEN + INTERMEDIATE          # 160
_POOLW_OFF = NUM_LAYERS * _W_ROWS_PER_LAYER                          # 320
W_SLAB_ROWS = _POOLW_OFF + HIDDEN                                    # 352

# f32 vector slab: [emb_ln_g, emb_ln_b] + per layer
# [bqkv, bo, ln1_g, ln1_b, bi, bf, ln2_g, ln2_b] + [pool_b, cls_w, cls_b]
_VROWS_PER_LAYER = 8
_VROW_LAYER0 = 2
_VROW_POOLB = _VROW_LAYER0 + NUM_LAYERS * _VROWS_PER_LAYER           # 18
_VROW_CLSW = _VROW_POOLB + 1                                         # 19
_VROW_CLSB = _VROW_POOLB + 2                                         # 20
V_SLAB_ROWS = _VROW_CLSB + 1                                         # 21


# ----------------------------- in-kernel helpers ---------------------------------
def _mm(x, w):
    """bf16 MXU matmul with f32 accumulation (astype on an already-bf16 operand is free)."""
    return jnp.dot(x.astype(jnp.bfloat16), w.astype(jnp.bfloat16),
                   preferred_element_type=jnp.float32)


def _ln(x, g, b):
    mu = jnp.mean(x, axis=-1, keepdims=True)
    xc = x - mu
    var = jnp.mean(xc * xc, axis=-1, keepdims=True)
    return xc * jax.lax.rsqrt(var + 1e-12) * g + b


def _gelu(y):
    # tanh-approx GELU (BERT "gelu_new").
    # TODO(synk): if the HF config uses erf-based "gelu", outputs differ at ~1e-3.
    return 0.5 * y * (1.0 + jnp.tanh(0.7978845608028654 * (y + 0.044715 * y * y * y)))


# ----------------------------- fused whole-model kernel --------------------------
def _fused_bert_kernel(emb_ref, bias_ref, ws_ref, vs_ref, out_ref):
    BS, H, HD, I = BATCH * SEQ, HIDDEN, HEAD_DIM, INTERMEDIATE

    def vrow(r, w):                       # (1, w) f32 row from the vector slab
        return vs_ref[r:r + 1, 0:w]

    def wmat(r0, rows, cols):             # (rows, cols) bf16 block from the weight slab
        return ws_ref[r0:r0 + rows, 0:cols]

    # Embedding LayerNorm: the whole batch lives as one (B*S, H) sublane-stacked slab.
    x = _ln(emb_ref[...], vrow(0, H), vrow(1, H))                       # (BS, H) f32

    # Block-diagonal + padding additive bias, built once in the wrapper.
    bias = bias_ref[...]                                                # (BS, BS) f32

    for l in range(NUM_LAYERS):
        wbase = l * _W_ROWS_PER_LAYER
        vbase = _VROW_LAYER0 + l * _VROWS_PER_LAYER

        # --- self-attention: fused QKV projection over the whole stacked batch ------
        qkv = _mm(x, wmat(wbase, H, 3 * H)) + vrow(vbase + 0, 3 * H)    # (BS, 3H)

        ctx_heads = []
        for h in range(NUM_HEADS):         # static loop; heads are static lane slices
            qh = qkv[:, h * HD:(h + 1) * HD]
            kh = qkv[:, H + h * HD:H + (h + 1) * HD]
            vh = qkv[:, 2 * H + h * HD:2 * H + (h + 1) * HD]
            # Contract last dims of q and k directly (no kh.T materialised).
            s = jax.lax.dot_general(
                qh.astype(jnp.bfloat16), kh.astype(jnp.bfloat16),
                (((1,), (1,)), ((), ())),
                preferred_element_type=jnp.float32) * _ATTN_SCALE + bias
            m = jnp.max(s, axis=-1, keepdims=True)
            p = jnp.exp(s - m)
            denom = jnp.sum(p, axis=-1, keepdims=True)
            p = p * pl.reciprocal(denom, approx=True)                   # EUP slot
            ctx_heads.append(_mm(p, vh))                                # (BS, HD)
        ctx = jnp.concatenate(ctx_heads, axis=-1)                       # (BS, H)

        attn_out = _mm(ctx, wmat(wbase + H, H, H)) + vrow(vbase + 1, H)
        x = _ln(attn_out + x, vrow(vbase + 2, H), vrow(vbase + 3, H))

        # --- feed-forward -------------------------------------------------------------
        inter = _gelu(_mm(x, wmat(wbase + 2 * H, H, I)) + vrow(vbase + 4, I))   # (BS, I)
        ffn = _mm(inter, wmat(wbase + 3 * H, I, H)) + vrow(vbase + 5, H)
        x = _ln(ffn + x, vrow(vbase + 6, H), vrow(vbase + 7, H))

    # --- pooler (CLS token of each example) + classifier + sigmoid --------------------
    cls = jnp.concatenate([x[b * SEQ:b * SEQ + 1, :] for b in range(BATCH)], axis=0)  # (B, H)
    pooled = jnp.tanh(_mm(cls, wmat(_POOLW_OFF, H, H)) + vrow(_VROW_POOLB, H))        # (B, H)
    # nn.Dropout(p=0.3) is identity at inference.
    # Classifier as elementwise multiply + lane reduction (avoids an N=1 MXU matmul).
    logit = (jnp.sum(pooled * vrow(_VROW_CLSW, H), axis=-1, keepdims=True)
             + vrow(_VROW_CLSB, 1))                                                   # (B, 1)
    score = 1.0 / (1.0 + jnp.exp(-logit))                               # exact sigmoid
    out_ref[...] = score.reshape(1, BATCH).astype(out_ref.dtype)        # single lane-packed store


# ----------------------------- parameter init & packing ---------------------------
def init_params(key):
    keys = iter(jax.random.split(key, 9))

    def nrm(shape):
        return jax.random.normal(next(keys), shape, dtype=jnp.float32) * 0.02

    L, H, I = NUM_LAYERS, HIDDEN, INTERMEDIATE
    return dict(
        word_emb=nrm((VOCAB, H)),
        pos_emb=nrm((MAX_POS, H)),
        type_emb=nrm((2, H)),
        emb_ln_g=jnp.ones((1, H), jnp.float32),
        emb_ln_b=jnp.zeros((1, H), jnp.float32),
        wqkv=nrm((L, H, 3 * H)),
        bqkv=jnp.zeros((L, 1, 3 * H), jnp.float32),
        wo=nrm((L, H, H)),
        bo=jnp.zeros((L, 1, H), jnp.float32),
        ln1_g=jnp.ones((L, 1, H), jnp.float32),
        ln1_b=jnp.zeros((L, 1, H), jnp.float32),
        wi=nrm((L, H, I)),
        bi=jnp.zeros((L, 1, I), jnp.float32),
        wf=nrm((L, I, H)),
        bf=jnp.zeros((L, 1, H), jnp.float32),
        ln2_g=jnp.ones((L, 1, H), jnp.float32),
        ln2_b=jnp.zeros((L, 1, H), jnp.float32),
        pool_w=nrm((H, H)),
        pool_b=jnp.zeros((1, H), jnp.float32),
        cls_w=nrm((1, H)),                 # row form for the lane-reduction classifier
        cls_b=jnp.zeros((1, 1), jnp.float32),
    )


def pack_params(p):
    """Pack all non-embedding weights into one bf16 slab + one f32 slab (done once)."""
    def pad_cols(a):
        return jnp.pad(a, ((0, 0), (0, W_PAD - a.shape[-1])))

    w_rows = []
    for l in range(NUM_LAYERS):
        w_rows += [pad_cols(p["wqkv"][l]), pad_cols(p["wo"][l]),
                   pad_cols(p["wi"][l]), pad_cols(p["wf"][l])]
    w_rows.append(pad_cols(p["pool_w"]))
    w_slab = jnp.concatenate(w_rows, axis=0).astype(jnp.bfloat16)      # (352, 96) bf16

    v_rows = [pad_cols(p["emb_ln_g"]), pad_cols(p["emb_ln_b"])]
    for l in range(NUM_LAYERS):
        v_rows += [pad_cols(p["bqkv"][l]), pad_cols(p["bo"][l]),
                   pad_cols(p["ln1_g"][l]), pad_cols(p["ln1_b"][l]),
                   pad_cols(p["bi"][l]), pad_cols(p["bf"][l]),
                   pad_cols(p["ln2_g"][l]), pad_cols(p["ln2_b"][l])]
    v_rows += [pad_cols(p["pool_b"]), pad_cols(p["cls_w"]), pad_cols(p["cls_b"])]
    v_slab = jnp.concatenate(v_rows, axis=0).astype(jnp.float32)       # (21, 96) f32

    assert w_slab.shape == (W_SLAB_ROWS, W_PAD)
    assert v_slab.shape == (V_SLAB_ROWS, W_PAD)
    return dict(word_emb=p["word_emb"], pos_emb=p["pos_emb"], type_emb=p["type_emb"],
                w_slab=w_slab, v_slab=v_slab)


# ----------------------------- forward pass ---------------------------------------
def bert_ai_search_forward(packed, ids, mask):
    """ids:(B,S) int32, mask:(B,S) float/int -> (B,1) sigmoid scores."""
    B, S = ids.shape
    H = HIDDEN

    # Embedding gather stays in plain JAX (glue); everything else runs in one kernel.
    emb = (packed["word_emb"][ids]
           + packed["pos_emb"][:S][None, :, :]
           + packed["type_emb"][0][None, None, :]).astype(jnp.float32)       # (B, S, H)
    emb = emb.reshape(B * S, H)                                              # sublane-stacked batch

    # Block-diagonal additive attention bias (prevents cross-example attention when the
    # batch is stacked) fused with the BERT padding-mask bias; computed once for all layers.
    ex = jnp.arange(B * S) // S
    same = ex[:, None] == ex[None, :]
    key_valid = mask.astype(jnp.float32).reshape(B * S) > 0.5
    bias = jnp.where(same & key_valid[None, :], 0.0, -10000.0).astype(jnp.float32)  # (B*S, B*S)

    out = pl.pallas_call(
        _fused_bert_kernel,
        out_shape=jax.ShapeDtypeStruct((1, B), jnp.float32),
        in_specs=[pl.BlockSpec(memory_space=pltpu.MemorySpace.VMEM)] * 4,    # whole arrays in VMEM
        out_specs=pl.BlockSpec(memory_space=pltpu.MemorySpace.VMEM),
    )(emb, bias, packed["w_slab"], packed["v_slab"])
    return out.reshape(B, 1)


bert_ai_search_forward_jit = jax.jit(bert_ai_search_forward)


# ----------------------------- main -----------------------------------------------
if __name__ == "__main__":
    root = jax.random.PRNGKey(0)
    k_params, k_ids = jax.random.split(root)

    packed = pack_params(init_params(k_params))
    ids = jax.random.randint(k_ids, (BATCH, SEQ), 0, VOCAB, dtype=jnp.int32)
    # attention mask: row 0 full, row 1 has 3 padding positions masked out.
    mask = jnp.array([[1, 1, 1, 1, 1, 1, 1, 1],
                      [1, 1, 1, 1, 1, 0, 0, 0]], dtype=jnp.float32)

    out = bert_ai_search_forward_jit(packed, ids, mask)
    out = jax.block_until_ready(out)

    assert out.shape == (BATCH, 1)
    assert bool(jnp.all((out > 0.0) & (out < 1.0)))
    print("KERNEL_OK")
</pallas_src>

<mosaic_0001>
module attributes {stable_mosaic.version = 11 : i64} {
  func.func @_fused_bert_kernel(%arg0: memref<16x32xf32, #tpu.memory_space<vmem>>, %arg1: memref<16x16xf32, #tpu.memory_space<vmem>>, %arg2: memref<352x96xbf16, #tpu.memory_space<vmem>>, %arg3: memref<21x96xf32, #tpu.memory_space<vmem>>, %arg4: memref<1x2xf32, #tpu.memory_space<vmem>>) attributes {dimension_semantics = [], scalar_prefetch = 0 : i64, scratch_operands = 0 : i64, tpu.core_type = #tpu.core_type<tc>} {
    %c0 = arith.constant 0 : index
    %c0_0 = arith.constant 0 : index
    %0 = vector.load %arg0[%c0, %c0_0] : memref<16x32xf32, #tpu.memory_space<vmem>>, vector<16x32xf32>
    %c0_1 = arith.constant 0 : index
    %c0_2 = arith.constant 0 : index
    %1 = vector.load %arg3[%c0_1, %c0_2] : memref<21x96xf32, #tpu.memory_space<vmem>>, vector<1x32xf32>
    %c1 = arith.constant 1 : index
    %c0_3 = arith.constant 0 : index
    %2 = vector.load %arg3[%c1, %c0_3] : memref<21x96xf32, #tpu.memory_space<vmem>>, vector<1x32xf32>
    %cst = arith.constant dense<0.000000e+00> : vector<16xf32>
    %3 = vector.multi_reduction <add>, %0, %cst [1] : vector<16x32xf32> to vector<16xf32>
    %4 = vector.shape_cast %3 : vector<16xf32> to vector<16x1xf32>
    %cst_4 = arith.constant 3.200000e+01 : f32
    %5 = vector.broadcast %cst_4 : f32 to vector<16x1xf32>
    %6 = arith.divf %4, %5 : vector<16x1xf32>
    %7 = vector.broadcast %6 : vector<16x1xf32> to vector<16x32xf32>
    %8 = arith.subf %0, %7 : vector<16x32xf32>
    %9 = arith.mulf %8, %8 : vector<16x32xf32>
    %cst_5 = arith.constant dense<0.000000e+00> : vector<16xf32>
    %10 = vector.multi_reduction <add>, %9, %cst_5 [1] : vector<16x32xf32> to vector<16xf32>
    %11 = vector.shape_cast %10 : vector<16xf32> to vector<16x1xf32>
    %cst_6 = arith.constant 3.200000e+01 : f32
    %12 = vector.broadcast %cst_6 : f32 to vector<16x1xf32>
    %13 = arith.divf %11, %12 : vector<16x1xf32>
    %cst_7 = arith.constant 9.99999996E-13 : f32
    %14 = vector.broadcast %cst_7 : f32 to vector<16x1xf32>
    %15 = arith.addf %13, %14 : vector<16x1xf32>
    %16 = math.rsqrt %15 : vector<16x1xf32>
    %17 = vector.broadcast %16 : vector<16x1xf32> to vector<16x32xf32>
    %18 = arith.mulf %8, %17 : vector<16x32xf32>
    %19 = vector.broadcast %1 : vector<1x32xf32> to vector<16x32xf32>
    %20 = arith.mulf %18, %19 : vector<16x32xf32>
    %21 = vector.broadcast %2 : vector<1x32xf32> to vector<16x32xf32>
    %22 = arith.addf %20, %21 : vector<16x32xf32>
    %c0_8 = arith.constant 0 : index
    %c0_9 = arith.constant 0 : index
    %23 = vector.load %arg1[%c0_8, %c0_9] : memref<16x16xf32, #tpu.memory_space<vmem>>, vector<16x16xf32>
    %c0_10 = arith.constant 0 : index
    %c0_11 = arith.constant 0 : index
    %24 = vector.load %arg2[%c0_10, %c0_11] : memref<352x96xbf16, #tpu.memory_space<vmem>>, vector<32x96xbf16>
    %25 = arith.truncf %22 : vector<16x32xf32> to vector<16x32xbf16>
    %cst_12 = arith.constant dense<0.000000e+00> : vector<16x96xf32>
    %26 = tpu.matmul %25, %24, %cst_12 {dimension_numbers = #tpu.dot_dimension_numbers<[1], [0], [0], [1], [0, 0, 1, 1], [], []>} : vector<16x32xbf16>, vector<32x96xbf16>, vector<16x96xf32> -> vector<16x96xf32>
    %c2 = arith.constant 2 : index
    %c0_13 = arith.constant 0 : index
    %27 = vector.load %arg3[%c2, %c0_13] : memref<21x96xf32, #tpu.memory_space<vmem>>, vector<1x96xf32>
    %28 = vector.broadcast %27 : vector<1x96xf32> to vector<16x96xf32>
    %29 = arith.addf %26, %28 : vector<16x96xf32>
    %30 = vector.extract_strided_slice %29 {offsets = [0, 0], sizes = [16, 16], strides = [1, 1]} : vector<16x96xf32> to vector<16x16xf32>
    %31 = vector.extract_strided_slice %29 {offsets = [0, 32], sizes = [16, 16], strides = [1, 1]} : vector<16x96xf32> to vector<16x16xf32>
    %32 = vector.extract_strided_slice %29 {offsets = [0, 64], sizes = [16, 16], strides = [1, 1]} : vector<16x96xf32> to vector<16x16xf32>
    %33 = arith.truncf %30 : vector<16x16xf32> to vector<16x16xbf16>
    %34 = arith.truncf %31 : vector<16x16xf32> to vector<16x16xbf16>
    %cst_14 = arith.constant dense<0.000000e+00> : vector<16x16xf32>
    %35 = tpu.matmul %33, %34, %cst_14 {dimension_numbers = #tpu.dot_dimension_numbers<[1], [1], [0], [0], [0, 0, 1, 0], [], []>} : vector<16x16xbf16>, vector<16x16xbf16>, vector<16x16xf32> -> vector<16x16xf32>
    %cst_15 = arith.constant 2.500000e-01 : f32
    %36 = vector.broadcast %cst_15 : f32 to vector<16x16xf32>
    %37 = arith.mulf %35, %36 : vector<16x16xf32>
    %38 = arith.addf %37, %23 : vector<16x16xf32>
    %cst_16 = arith.constant dense<0xFF800000> : vector<16xf32>
    %39 = vector.multi_reduction <maximumf>, %38, %cst_16 [1] : vector<16x16xf32> to vector<16xf32>
    %40 = vector.shape_cast %39 : vector<16xf32> to vector<16x1xf32>
    %41 = vector.broadcast %40 : vector<16x1xf32> to vector<16x16xf32>
    %42 = arith.subf %38, %41 : vector<16x16xf32>
    %43 = math.exp %42 : vector<16x16xf32>
    %cst_17 = arith.constant dense<0.000000e+00> : vector<16xf32>
    %44 = vector.multi_reduction <add>, %43, %cst_17 [1] : vector<16x16xf32> to vector<16xf32>
    %45 = vector.shape_cast %44 : vector<16xf32> to vector<16x1xf32>
    %46 = tpu.reciprocal %45 {approx = true} : vector<16x1xf32> -> vector<16x1xf32>
    %47 = vector.broadcast %46 : vector<16x1xf32> to vector<16x16xf32>
    %48 = arith.mulf %43, %47 : vector<16x16xf32>
    %49 = arith.truncf %48 : vector<16x16xf32> to vector<16x16xbf16>
    %50 = arith.truncf %32 : vector<16x16xf32> to vector<16x16xbf16>
    %cst_18 = arith.constant dense<0.000000e+00> : vector<16x16xf32>
    %51 = tpu.matmul %49, %50, %cst_18 {dimension_numbers = #tpu.dot_dimension_numbers<[1], [0], [0], [1], [0, 0, 1, 1], [], []>} : vector<16x16xbf16>, vector<16x16xbf16>, vector<16x16xf32> -> vector<16x16xf32>
    %52 = vector.extract_strided_slice %29 {offsets = [0, 16], sizes = [16, 16], strides = [1, 1]} : vector<16x96xf32> to vector<16x16xf32>
    %53 = vector.extract_strided_slice %29 {offsets = [0, 48], sizes = [16, 16], strides = [1, 1]} : vector<16x96xf32> to vector<16x16xf32>
    %54 = vector.extract_strided_slice %29 {offsets = [0, 80], sizes = [16, 16], strides = [1, 1]} : vector<16x96xf32> to vector<16x16xf32>
    %55 = arith.truncf %52 : vector<16x16xf32> to vector<16x16xbf16>
    %56 = arith.truncf %53 : vector<16x16xf32> to vector<16x16xbf16>
    %cst_19 = arith.constant dense<0.000000e+00> : vector<16x16xf32>
    %57 = tpu.matmul %55, %56, %cst_19 {dimension_numbers = #tpu.dot_dimension_numbers<[1], [1], [0], [0], [0, 0, 1, 0], [], []>} : vector<16x16xbf16>, vector<16x16xbf16>, vector<16x16xf32> -> vector<16x16xf32>
    %cst_20 = arith.constant 2.500000e-01 : f32
    %58 = vector.broadcast %cst_20 : f32 to vector<16x16xf32>
    %59 = arith.mulf %57, %58 : vector<16x16xf32>
    %60 = arith.addf %59, %23 : vector<16x16xf32>
    %cst_21 = arith.constant dense<0xFF800000> : vector<16xf32>
    %61 = vector.multi_reduction <maximumf>, %60, %cst_21 [1] : vector<16x16xf32> to vector<16xf32>
    %62 = vector.shape_cast %61 : vector<16xf32> to vector<16x1xf32>
    %63 = vector.broadcast %62 : vector<16x1xf32> to vector<16x16xf32>
    %64 = arith.subf %60, %63 : vector<16x16xf32>
    %65 = math.exp %64 : vector<16x16xf32>
    %cst_22 = arith.constant dense<0.000000e+00> : vector<16xf32>
    %66 = vector.multi_reduction <add>, %65, %cst_22 [1] : vector<16x16xf32> to vector<16xf32>
    %67 = vector.shape_cast %66 : vector<16xf32> to vector<16x1xf32>
    %68 = tpu.reciprocal %67 {approx = true} : vector<16x1xf32> -> vector<16x1xf32>
    %69 = vector.broadcast %68 : vector<16x1xf32> to vector<16x16xf32>
    %70 = arith.mulf %65, %69 : vector<16x16xf32>
    %71 = arith.truncf %70 : vector<16x16xf32> to vector<16x16xbf16>
    %72 = arith.truncf %54 : vector<16x16xf32> to vector<16x16xbf16>
    %cst_23 = arith.constant dense<0.000000e+00> : vector<16x16xf32>
    %73 = tpu.matmul %71, %72, %cst_23 {dimension_numbers = #tpu.dot_dimension_numbers<[1], [0], [0], [1], [0, 0, 1, 1], [], []>} : vector<16x16xbf16>, vector<16x16xbf16>, vector<16x16xf32> -> vector<16x16xf32>
    %74 = tpu.concatenate %51, %73 in 1 : vector<16x16xf32>, vector<16x16xf32> -> vector<16x32xf32>
    %c32 = arith.constant 32 : index
    %c0_24 = arith.constant 0 : index
    %75 = vector.load %arg2[%c32, %c0_24] : memref<352x96xbf16, #tpu.memory_space<vmem>>, vector<32x32xbf16>
    %76 = arith.truncf %74 : vector<16x32xf32> to vector<16x32xbf16>
    %cst_25 = arith.constant dense<0.000000e+00> : vector<16x32xf32>
    %77 = tpu.matmul %76, %75, %cst_25 {dimension_numbers = #tpu.dot_dimension_numbers<[1], [0], [0], [1], [0, 0, 1, 1], [], []>} : vector<16x32xbf16>, vector<32x32xbf16>, vector<16x32xf32> -> vector<16x32xf32>
    %c3 = arith.constant 3 : index
    %c0_26 = arith.constant 0 : index
    %78 = vector.load %arg3[%c3, %c0_26] : memref<21x96xf32, #tpu.memory_space<vmem>>, vector<1x32xf32>
    %79 = vector.broadcast %78 : vector<1x32xf32> to vector<16x32xf32>
    %80 = arith.addf %77, %79 : vector<16x32xf32>
    %81 = arith.addf %80, %22 : vector<16x32xf32>
    %c4 = arith.constant 4 : index
    %c0_27 = arith.constant 0 : index
    %82 = vector.load %arg3[%c4, %c0_27] : memref<21x96xf32, #tpu.memory_space<vmem>>, vector<1x32xf32>
    %c5 = arith.constant 5 : index
    %c0_28 = arith.constant 0 : index
    %83 = vector.load %arg3[%c5, %c0_28] : memref<21x96xf32, #tpu.memory_space<vmem>>, vector<1x32xf32>
    %cst_29 = arith.constant dense<0.000000e+00> : vector<16xf32>
    %84 = vector.multi_reduction <add>, %81, %cst_29 [1] : vector<16x32xf32> to vector<16xf32>
    %85 = vector.shape_cast %84 : vector<16xf32> to vector<16x1xf32>
    %cst_30 = arith.constant 3.200000e+01 : f32
    %86 = vector.broadcast %cst_30 : f32 to vector<16x1xf32>
    %87 = arith.divf %85, %86 : vector<16x1xf32>
    %88 = vector.broadcast %87 : vector<16x1xf32> to vector<16x32xf32>
    %89 = arith.subf %81, %88 : vector<16x32xf32>
    %90 = arith.mulf %89, %89 : vector<16x32xf32>
    %cst_31 = arith.constant dense<0.000000e+00> : vector<16xf32>
    %91 = vector.multi_reduction <add>, %90, %cst_31 [1] : vector<16x32xf32> to vector<16xf32>
    %92 = vector.shape_cast %91 : vector<16xf32> to vector<16x1xf32>
    %cst_32 = arith.constant 3.200000e+01 : f32
    %93 = vector.broadcast %cst_32 : f32 to vector<16x1xf32>
    %94 = arith.divf %92, %93 : vector<16x1xf32>
    %cst_33 = arith.constant 9.99999996E-13 : f32
    %95 = vector.broadcast %cst_33 : f32 to vector<16x1xf32>
    %96 = arith.addf %94, %95 : vector<16x1xf32>
    %97 = math.rsqrt %96 : vector<16x1xf32>
    %98 = vector.broadcast %97 : vector<16x1xf32> to vector<16x32xf32>
    %99 = arith.mulf %89, %98 : vector<16x32xf32>
    %100 = vector.broadcast %82 : vector<1x32xf32> to vector<16x32xf32>
    %101 = arith.mulf %99, %100 : vector<16x32xf32>
    %102 = vector.broadcast %83 : vector<1x32xf32> to vector<16x32xf32>
    %103 = arith.addf %101, %102 : vector<16x32xf32>
    %c64 = arith.constant 64 : index
    %c0_34 = arith.constant 0 : index
    %104 = vector.load %arg2[%c64, %c0_34] : memref<352x96xbf16, #tpu.memory_space<vmem>>, vector<32x64xbf16>
    %105 = arith.truncf %103 : vector<16x32xf32> to vector<16x32xbf16>
    %cst_35 = arith.constant dense<0.000000e+00> : vector<16x64xf32>
    %106 = tpu.matmul %105, %104, %cst_35 {dimension_numbers = #tpu.dot_dimension_numbers<[1], [0], [0], [1], [0, 0, 1, 1], [], []>} : vector<16x32xbf16>, vector<32x64xbf16>, vector<16x64xf32> -> vector<16x64xf32>
    %c6 = arith.constant 6 : index
    %c0_36 = arith.constant 0 : index
    %107 = vector.load %arg3[%c6, %c0_36] : memref<21x96xf32, #tpu.memory_space<vmem>>, vector<1x64xf32>
    %108 = vector.broadcast %107 : vector<1x64xf32> to vector<16x64xf32>
    %109 = arith.addf %106, %108 : vector<16x64xf32>
    %cst_37 = arith.constant 5.000000e-01 : f32
    %110 = vector.broadcast %cst_37 : f32 to vector<16x64xf32>
    %111 = arith.mulf %110, %109 : vector<16x64xf32>
    %cst_38 = arith.constant 4.471500e-02 : f32
    %112 = vector.broadcast %cst_38 : f32 to vector<16x64xf32>
    %113 = arith.mulf %112, %109 : vector<16x64xf32>
    %114 = arith.mulf %113, %109 : vector<16x64xf32>
    %115 = arith.mulf %114, %109 : vector<16x64xf32>
    %116 = arith.addf %109, %115 : vector<16x64xf32>
    %cst_39 = arith.constant 0.797884583 : f32
    %117 = vector.broadcast %cst_39 : f32 to vector<16x64xf32>
    %118 = arith.mulf %117, %116 : vector<16x64xf32>
    %119 = math.tanh %118 : vector<16x64xf32>
    %cst_40 = arith.constant 1.000000e+00 : f32
    %120 = vector.broadcast %cst_40 : f32 to vector<16x64xf32>
    %121 = arith.addf %120, %119 : vector<16x64xf32>
    %122 = arith.mulf %111, %121 : vector<16x64xf32>
    %c96 = arith.constant 96 : index
    %c0_41 = arith.constant 0 : index
    %123 = vector.load %arg2[%c96, %c0_41] : memref<352x96xbf16, #tpu.memory_space<vmem>>, vector<64x32xbf16>
    %124 = arith.truncf %122 : vector<16x64xf32> to vector<16x64xbf16>
    %cst_42 = arith.constant dense<0.000000e+00> : vector<16x32xf32>
    %125 = tpu.matmul %124, %123, %cst_42 {dimension_numbers = #tpu.dot_dimension_numbers<[1], [0], [0], [1], [0, 0, 1, 1], [], []>} : vector<16x64xbf16>, vector<64x32xbf16>, vector<16x32xf32> -> vector<16x32xf32>
    %c7 = arith.constant 7 : index
    %c0_43 = arith.constant 0 : index
    %126 = vector.load %arg3[%c7, %c0_43] : memref<21x96xf32, #tpu.memory_space<vmem>>, vector<1x32xf32>
    %127 = vector.broadcast %126 : vector<1x32xf32> to vector<16x32xf32>
    %128 = arith.addf %125, %127 : vector<16x32xf32>
    %129 = arith.addf %128, %103 : vector<16x32xf32>
    %c8 = arith.constant 8 : index
    %c0_44 = arith.constant 0 : index
    %130 = vector.load %arg3[%c8, %c0_44] : memref<21x96xf32, #tpu.memory_space<vmem>>, vector<1x32xf32>
    %c9 = arith.constant 9 : index
    %c0_45 = arith.constant 0 : index
    %131 = vector.load %arg3[%c9, %c0_45] : memref<21x96xf32, #tpu.memory_space<vmem>>, vector<1x32xf32>
    %cst_46 = arith.constant dense<0.000000e+00> : vector<16xf32>
    %132 = vector.multi_reduction <add>, %129, %cst_46 [1] : vector<16x32xf32> to vector<16xf32>
    %133 = vector.shape_cast %132 : vector<16xf32> to vector<16x1xf32>
    %cst_47 = arith.constant 3.200000e+01 : f32
    %134 = vector.broadcast %cst_47 : f32 to vector<16x1xf32>
    %135 = arith.divf %133, %134 : vector<16x1xf32>
    %136 = vector.broadcast %135 : vector<16x1xf32> to vector<16x32xf32>
    %137 = arith.subf %129, %136 : vector<16x32xf32>
    %138 = arith.mulf %137, %137 : vector<16x32xf32>
    %cst_48 = arith.constant dense<0.000000e+00> : vector<16xf32>
    %139 = vector.multi_reduction <add>, %138, %cst_48 [1] : vector<16x32xf32> to vector<16xf32>
    %140 = vector.shape_cast %139 : vector<16xf32> to vector<16x1xf32>
    %cst_49 = arith.constant 3.200000e+01 : f32
    %141 = vector.broadcast %cst_49 : f32 to vector<16x1xf32>
    %142 = arith.divf %140, %141 : vector<16x1xf32>
    %cst_50 = arith.constant 9.99999996E-13 : f32
    %143 = vector.broadcast %cst_50 : f32 to vector<16x1xf32>
    %144 = arith.addf %142, %143 : vector<16x1xf32>
    %145 = math.rsqrt %144 : vector<16x1xf32>
    %146 = vector.broadcast %145 : vector<16x1xf32> to vector<16x32xf32>
    %147 = arith.mulf %137, %146 : vector<16x32xf32>
    %148 = vector.broadcast %130 : vector<1x32xf32> to vector<16x32xf32>
    %149 = arith.mulf %147, %148 : vector<16x32xf32>
    %150 = vector.broadcast %131 : vector<1x32xf32> to vector<16x32xf32>
    %151 = arith.addf %149, %150 : vector<16x32xf32>
    %c160 = arith.constant 160 : index
    %c0_51 = arith.constant 0 : index
    %152 = vector.load %arg2[%c160, %c0_51] : memref<352x96xbf16, #tpu.memory_space<vmem>>, vector<32x96xbf16>
    %153 = arith.truncf %151 : vector<16x32xf32> to vector<16x32xbf16>
    %cst_52 = arith.constant dense<0.000000e+00> : vector<16x96xf32>
    %154 = tpu.matmul %153, %152, %cst_52 {dimension_numbers = #tpu.dot_dimension_numbers<[1], [0], [0], [1], [0, 0, 1, 1], [], []>} : vector<16x32xbf16>, vector<32x96xbf16>, vector<16x96xf32> -> vector<16x96xf32>
    %c10 = arith.constant 10 : index
    %c0_53 = arith.constant 0 : index
    %155 = vector.load %arg3[%c10, %c0_53] : memref<21x96xf32, #tpu.memory_space<vmem>>, vector<1x96xf32>
    %156 = vector.broadcast %155 : vector<1x96xf32> to vector<16x96xf32>
    %157 = arith.addf %154, %156 : vector<16x96xf32>
    %158 = vector.extract_strided_slice %157 {offsets = [0, 0], sizes = [16, 16], strides = [1, 1]} : vector<16x96xf32> to vector<16x16xf32>
    %159 = vector.extract_strided_slice %157 {offsets = [0, 32], sizes = [16, 16], strides = [1, 1]} : vector<16x96xf32> to vector<16x16xf32>
    %160 = vector.extract_strided_slice %157 {offsets = [0, 64], sizes = [16, 16], strides = [1, 1]} : vector<16x96xf32> to vector<16x16xf32>
    %161 = arith.truncf %158 : vector<16x16xf32> to vector<16x16xbf16>
    %162 = arith.truncf %159 : vector<16x16xf32> to vector<16x16xbf16>
    %cst_54 = arith.constant dense<0.000000e+00> : vector<16x16xf32>
    %163 = tpu.matmul %161, %162, %cst_54 {dimension_numbers = #tpu.dot_dimension_numbers<[1], [1], [0], [0], [0, 0, 1, 0], [], []>} : vector<16x16xbf16>, vector<16x16xbf16>, vector<16x16xf32> -> vector<16x16xf32>
    %cst_55 = arith.constant 2.500000e-01 : f32
    %164 = vector.broadcast %cst_55 : f32 to vector<16x16xf32>
    %165 = arith.mulf %163, %164 : vector<16x16xf32>
    %166 = arith.addf %165, %23 : vector<16x16xf32>
    %cst_56 = arith.constant dense<0xFF800000> : vector<16xf32>
    %167 = vector.multi_reduction <maximumf>, %166, %cst_56 [1] : vector<16x16xf32> to vector<16xf32>
    %168 = vector.shape_cast %167 : vector<16xf32> to vector<16x1xf32>
    %169 = vector.broadcast %168 : vector<16x1xf32> to vector<16x16xf32>
    %170 = arith.subf %166, %169 : vector<16x16xf32>
    %171 = math.exp %170 : vector<16x16xf32>
    %cst_57 = arith.constant dense<0.000000e+00> : vector<16xf32>
    %172 = vector.multi_reduction <add>, %171, %cst_57 [1] : vector<16x16xf32> to vector<16xf32>
    %173 = vector.shape_cast %172 : vector<16xf32> to vector<16x1xf32>
    %174 = tpu.reciprocal %173 {approx = true} : vector<16x1xf32> -> vector<16x1xf32>
    %175 = vector.broadcast %174 : vector<16x1xf32> to vector<16x16xf32>
    %176 = arith.mulf %171, %175 : vector<16x16xf32>
    %177 = arith.truncf %176 : vector<16x16xf32> to vector<16x16xbf16>
    %178 = arith.truncf %160 : vector<16x16xf32> to vector<16x16xbf16>
    %cst_58 = arith.constant dense<0.000000e+00> : vector<16x16xf32>
    %179 = tpu.matmul %177, %178, %cst_58 {dimension_numbers = #tpu.dot_dimension_numbers<[1], [0], [0], [1], [0, 0, 1, 1], [], []>} : vector<16x16xbf16>, vector<16x16xbf16>, vector<16x16xf32> -> vector<16x16xf32>
    %180 = vector.extract_strided_slice %157 {offsets = [0, 16], sizes = [16, 16], strides = [1, 1]} : vector<16x96xf32> to vector<16x16xf32>
    %181 = vector.extract_strided_slice %157 {offsets = [0, 48], sizes = [16, 16], strides = [1, 1]} : vector<16x96xf32> to vector<16x16xf32>
    %182 = vector.extract_strided_slice %157 {offsets = [0, 80], sizes = [16, 16], strides = [1, 1]} : vector<16x96xf32> to vector<16x16xf32>
    %183 = arith.truncf %180 : vector<16x16xf32> to vector<16x16xbf16>
    %184 = arith.truncf %181 : vector<16x16xf32> to vector<16x16xbf16>
    %cst_59 = arith.constant dense<0.000000e+00> : vector<16x16xf32>
    %185 = tpu.matmul %183, %184, %cst_59 {dimension_numbers = #tpu.dot_dimension_numbers<[1], [1], [0], [0], [0, 0, 1, 0], [], []>} : vector<16x16xbf16>, vector<16x16xbf16>, vector<16x16xf32> -> vector<16x16xf32>
    %cst_60 = arith.constant 2.500000e-01 : f32
    %186 = vector.broadcast %cst_60 : f32 to vector<16x16xf32>
    %187 = arith.mulf %185, %186 : vector<16x16xf32>
    %188 = arith.addf %187, %23 : vector<16x16xf32>
    %cst_61 = arith.constant dense<0xFF800000> : vector<16xf32>
    %189 = vector.multi_reduction <maximumf>, %188, %cst_61 [1] : vector<16x16xf32> to vector<16xf32>
    %190 = vector.shape_cast %189 : vector<16xf32> to vector<16x1xf32>
    %191 = vector.broadcast %190 : vector<16x1xf32> to vector<16x16xf32>
    %192 = arith.subf %188, %191 : vector<16x16xf32>
    %193 = math.exp %192 : vector<16x16xf32>
    %cst_62 = arith.constant dense<0.000000e+00> : vector<16xf32>
    %194 = vector.multi_reduction <add>, %193, %cst_62 [1] : vector<16x16xf32> to vector<16xf32>
    %195 = vector.shape_cast %194 : vector<16xf32> to vector<16x1xf32>
    %196 = tpu.reciprocal %195 {approx = true} : vector<16x1xf32> -> vector<16x1xf32>
    %197 = vector.broadcast %196 : vector<16x1xf32> to vector<16x16xf32>
    %198 = arith.mulf %193, %197 : vector<16x16xf32>
    %199 = arith.truncf %198 : vector<16x16xf32> to vector<16x16xbf16>
    %200 = arith.truncf %182 : vector<16x16xf32> to vector<16x16xbf16>
    %cst_63 = arith.constant dense<0.000000e+00> : vector<16x16xf32>
    %201 = tpu.matmul %199, %200, %cst_63 {dimension_numbers = #tpu.dot_dimension_numbers<[1], [0], [0], [1], [0, 0, 1, 1], [], []>} : vector<16x16xbf16>, vector<16x16xbf16>, vector<16x16xf32> -> vector<16x16xf32>
    %202 = tpu.concatenate %179, %201 in 1 : vector<16x16xf32>, vector<16x16xf32> -> vector<16x32xf32>
    %c192 = arith.constant 192 : index
    %c0_64 = arith.constant 0 : index
    %203 = vector.load %arg2[%c192, %c0_64] : memref<352x96xbf16, #tpu.memory_space<vmem>>, vector<32x32xbf16>
    %204 = arith.truncf %202 : vector<16x32xf32> to vector<16x32xbf16>
    %cst_65 = arith.constant dense<0.000000e+00> : vector<16x32xf32>
    %205 = tpu.matmul %204, %203, %cst_65 {dimension_numbers = #tpu.dot_dimension_numbers<[1], [0], [0], [1], [0, 0, 1, 1], [], []>} : vector<16x32xbf16>, vector<32x32xbf16>, vector<16x32xf32> -> vector<16x32xf32>
    %c11 = arith.constant 11 : index
    %c0_66 = arith.constant 0 : index
    %206 = vector.load %arg3[%c11, %c0_66] : memref<21x96xf32, #tpu.memory_space<vmem>>, vector<1x32xf32>
    %207 = vector.broadcast %206 : vector<1x32xf32> to vector<16x32xf32>
    %208 = arith.addf %205, %207 : vector<16x32xf32>
    %209 = arith.addf %208, %151 : vector<16x32xf32>
    %c12 = arith.constant 12 : index
    %c0_67 = arith.constant 0 : index
    %210 = vector.load %arg3[%c12, %c0_67] : memref<21x96xf32, #tpu.memory_space<vmem>>, vector<1x32xf32>
    %c13 = arith.constant 13 : index
    %c0_68 = arith.constant 0 : index
    %211 = vector.load %arg3[%c13, %c0_68] : memref<21x96xf32, #tpu.memory_space<vmem>>, vector<1x32xf32>
    %cst_69 = arith.constant dense<0.000000e+00> : vector<16xf32>
    %212 = vector.multi_reduction <add>, %209, %cst_69 [1] : vector<16x32xf32> to vector<16xf32>
    %213 = vector.shape_cast %212 : vector<16xf32> to vector<16x1xf32>
    %cst_70 = arith.constant 3.200000e+01 : f32
    %214 = vector.broadcast %cst_70 : f32 to vector<16x1xf32>
    %215 = arith.divf %213, %214 : vector<16x1xf32>
    %216 = vector.broadcast %215 : vector<16x1xf32> to vector<16x32xf32>
    %217 = arith.subf %209, %216 : vector<16x32xf32>
    %218 = arith.mulf %217, %217 : vector<16x32xf32>
    %cst_71 = arith.constant dense<0.000000e+00> : vector<16xf32>
    %219 = vector.multi_reduction <add>, %218, %cst_71 [1] : vector<16x32xf32> to vector<16xf32>
    %220 = vector.shape_cast %219 : vector<16xf32> to vector<16x1xf32>
    %cst_72 = arith.constant 3.200000e+01 : f32
    %221 = vector.broadcast %cst_72 : f32 to vector<16x1xf32>
    %222 = arith.divf %220, %221 : vector<16x1xf32>
    %cst_73 = arith.constant 9.99999996E-13 : f32
    %223 = vector.broadcast %cst_73 : f32 to vector<16x1xf32>
    %224 = arith.addf %222, %223 : vector<16x1xf32>
    %225 = math.rsqrt %224 : vector<16x1xf32>
    %226 = vector.broadcast %225 : vector<16x1xf32> to vector<16x32xf32>
    %227 = arith.mulf %217, %226 : vector<16x32xf32>
    %228 = vector.broadcast %210 : vector<1x32xf32> to vector<16x32xf32>
    %229 = arith.mulf %227, %228 : vector<16x32xf32>
    %230 = vector.broadcast %211 : vector<1x32xf32> to vector<16x32xf32>
    %231 = arith.addf %229, %230 : vector<16x32xf32>
    %c224 = arith.constant 224 : index
    %c0_74 = arith.constant 0 : index
    %232 = vector.load %arg2[%c224, %c0_74] : memref<352x96xbf16, #tpu.memory_space<vmem>>, vector<32x64xbf16>
    %233 = arith.truncf %231 : vector<16x32xf32> to vector<16x32xbf16>
    %cst_75 = arith.constant dense<0.000000e+00> : vector<16x64xf32>
    %234 = tpu.matmul %233, %232, %cst_75 {dimension_numbers = #tpu.dot_dimension_numbers<[1], [0], [0], [1], [0, 0, 1, 1], [], []>} : vector<16x32xbf16>, vector<32x64xbf16>, vector<16x64xf32> -> vector<16x64xf32>
    %c14 = arith.constant 14 : index
    %c0_76 = arith.constant 0 : index
    %235 = vector.load %arg3[%c14, %c0_76] : memref<21x96xf32, #tpu.memory_space<vmem>>, vector<1x64xf32>
    %236 = vector.broadcast %235 : vector<1x64xf32> to vector<16x64xf32>
    %237 = arith.addf %234, %236 : vector<16x64xf32>
    %cst_77 = arith.constant 5.000000e-01 : f32
    %238 = vector.broadcast %cst_77 : f32 to vector<16x64xf32>
    %239 = arith.mulf %238, %237 : vector<16x64xf32>
    %cst_78 = arith.constant 4.471500e-02 : f32
    %240 = vector.broadcast %cst_78 : f32 to vector<16x64xf32>
    %241 = arith.mulf %240, %237 : vector<16x64xf32>
    %242 = arith.mulf %241, %237 : vector<16x64xf32>
    %243 = arith.mulf %242, %237 : vector<16x64xf32>
    %244 = arith.addf %237, %243 : vector<16x64xf32>
    %cst_79 = arith.constant 0.797884583 : f32
    %245 = vector.broadcast %cst_79 : f32 to vector<16x64xf32>
    %246 = arith.mulf %245, %244 : vector<16x64xf32>
    %247 = math.tanh %246 : vector<16x64xf32>
    %cst_80 = arith.constant 1.000000e+00 : f32
    %248 = vector.broadcast %cst_80 : f32 to vector<16x64xf32>
    %249 = arith.addf %248, %247 : vector<16x64xf32>
    %250 = arith.mulf %239, %249 : vector<16x64xf32>
    %c256 = arith.constant 256 : index
    %c0_81 = arith.constant 0 : index
    %251 = vector.load %arg2[%c256, %c0_81] : memref<352x96xbf16, #tpu.memory_space<vmem>>, vector<64x32xbf16>
    %252 = arith.truncf %250 : vector<16x64xf32> to vector<16x64xbf16>
    %cst_82 = arith.constant dense<0.000000e+00> : vector<16x32xf32>
    %253 = tpu.matmul %252, %251, %cst_82 {dimension_numbers = #tpu.dot_dimension_numbers<[1], [0], [0], [1], [0, 0, 1, 1], [], []>} : vector<16x64xbf16>, vector<64x32xbf16>, vector<16x32xf32> -> vector<16x32xf32>
    %c15 = arith.constant 15 : index
    %c0_83 = arith.constant 0 : index
    %254 = vector.load %arg3[%c15, %c0_83] : memref<21x96xf32, #tpu.memory_space<vmem>>, vector<1x32xf32>
    %255 = vector.broadcast %254 : vector<1x32xf32> to vector<16x32xf32>
    %256 = arith.addf %253, %255 : vector<16x32xf32>
    %257 = arith.addf %256, %231 : vector<16x32xf32>
    %c16 = arith.constant 16 : index
    %c0_84 = arith.constant 0 : index
    %258 = vector.load %arg3[%c16, %c0_84] : memref<21x96xf32, #tpu.memory_space<vmem>>, vector<1x32xf32>
    %c17 = arith.constant 17 : index
    %c0_85 = arith.constant 0 : index
    %259 = vector.load %arg3[%c17, %c0_85] : memref<21x96xf32, #tpu.memory_space<vmem>>, vector<1x32xf32>
    %cst_86 = arith.constant dense<0.000000e+00> : vector<16xf32>
    %260 = vector.multi_reduction <add>, %257, %cst_86 [1] : vector<16x32xf32> to vector<16xf32>
    %261 = vector.shape_cast %260 : vector<16xf32> to vector<16x1xf32>
    %cst_87 = arith.constant 3.200000e+01 : f32
    %262 = vector.broadcast %cst_87 : f32 to vector<16x1xf32>
    %263 = arith.divf %261, %262 : vector<16x1xf32>
    %264 = vector.broadcast %263 : vector<16x1xf32> to vector<16x32xf32>
    %265 = arith.subf %257, %264 : vector<16x32xf32>
    %266 = arith.mulf %265, %265 : vector<16x32xf32>
    %cst_88 = arith.constant dense<0.000000e+00> : vector<16xf32>
    %267 = vector.multi_reduction <add>, %266, %cst_88 [1] : vector<16x32xf32> to vector<16xf32>
    %268 = vector.shape_cast %267 : vector<16xf32> to vector<16x1xf32>
    %cst_89 = arith.constant 3.200000e+01 : f32
    %269 = vector.broadcast %cst_89 : f32 to vector<16x1xf32>
    %270 = arith.divf %268, %269 : vector<16x1xf32>
    %cst_90 = arith.constant 9.99999996E-13 : f32
    %271 = vector.broadcast %cst_90 : f32 to vector<16x1xf32>
    %272 = arith.addf %270, %271 : vector<16x1xf32>
    %273 = math.rsqrt %272 : vector<16x1xf32>
    %274 = vector.broadcast %273 : vector<16x1xf32> to vector<16x32xf32>
    %275 = arith.mulf %265, %274 : vector<16x32xf32>
    %276 = vector.broadcast %258 : vector<1x32xf32> to vector<16x32xf32>
    %277 = arith.mulf %275, %276 : vector<16x32xf32>
    %278 = vector.broadcast %259 : vector<1x32xf32> to vector<16x32xf32>
    %279 = arith.addf %277, %278 : vector<16x32xf32>
    %280 = vector.extract_strided_slice %279 {offsets = [0, 0], sizes = [1, 32], strides = [1, 1]} : vector<16x32xf32> to vector<1x32xf32>
    %281 = vector.extract_strided_slice %279 {offsets = [8, 0], sizes = [1, 32], strides = [1, 1]} : vector<16x32xf32> to vector<1x32xf32>
    %282 = tpu.concatenate %280, %281 in 0 : vector<1x32xf32>, vector<1x32xf32> -> vector<2x32xf32>
    %c320 = arith.constant 320 : index
    %c0_91 = arith.constant 0 : index
    %283 = vector.load %arg2[%c320, %c0_91] : memref<352x96xbf16, #tpu.memory_space<vmem>>, vector<32x32xbf16>
    %284 = arith.truncf %282 : vector<2x32xf32> to vector<2x32xbf16>
    %cst_92 = arith.constant dense<0.000000e+00> : vector<2x32xf32>
    %285 = tpu.matmul %284, %283, %cst_92 {dimension_numbers = #tpu.dot_dimension_numbers<[1], [0], [0], [1], [0, 0, 1, 1], [], []>} : vector<2x32xbf16>, vector<32x32xbf16>, vector<2x32xf32> -> vector<2x32xf32>
    %c18 = arith.constant 18 : index
    %c0_93 = arith.constant 0 : index
    %286 = vector.load %arg3[%c18, %c0_93] : memref<21x96xf32, #tpu.memory_space<vmem>>, vector<1x32xf32>
    %287 = vector.broadcast %286 : vector<1x32xf32> to vector<2x32xf32>
    %288 = arith.addf %285, %287 : vector<2x32xf32>
    %289 = math.tanh %288 : vector<2x32xf32>
    %c19 = arith.constant 19 : index
    %c0_94 = arith.constant 0 : index
    %290 = vector.load %arg3[%c19, %c0_94] : memref<21x96xf32, #tpu.memory_space<vmem>>, vector<1x32xf32>
    %291 = vector.broadcast %290 : vector<1x32xf32> to vector<2x32xf32>
    %292 = arith.mulf %289, %291 : vector<2x32xf32>
    %cst_95 = arith.constant dense<0.000000e+00> : vector<2xf32>
    %293 = vector.multi_reduction <add>, %292, %cst_95 [1] : vector<2x32xf32> to vector<2xf32>
    %294 = vector.shape_cast %293 : vector<2xf32> to vector<2x1xf32>
    %c20 = arith.constant 20 : index
    %c0_96 = arith.constant 0 : index
    %295 = vector.load %arg3[%c20, %c0_96] : memref<21x96xf32, #tpu.memory_space<vmem>>, vector<1x1xf32>
    %296 = vector.broadcast %295 : vector<1x1xf32> to vector<2x1xf32>
    %297 = arith.addf %294, %296 : vector<2x1xf32>
    %cst_97 = arith.constant 0.000000e+00 : f32
    %298 = vector.broadcast %cst_97 : f32 to vector<2x1xf32>
    %299 = arith.subf %298, %297 : vector<2x1xf32>
    %300 = math.exp %299 : vector<2x1xf32>
    %cst_98 = arith.constant 1.000000e+00 : f32
    %301 = vector.broadcast %cst_98 : f32 to vector<2x1xf32>
    %302 = arith.addf %301, %300 : vector<2x1xf32>
    %cst_99 = arith.constant 1.000000e+00 : f32
    %303 = vector.broadcast %cst_99 : f32 to vector<2x1xf32>
    %304 = arith.divf %303, %302 : vector<2x1xf32>
    %305 = vector.shape_cast %304 : vector<2x1xf32> to vector<1x2xf32>
    %c0_100 = arith.constant 0 : index
    %c0_101 = arith.constant 0 : index
    %306 = vector.load %arg4[%c0_100, %c0_101] : memref<1x2xf32, #tpu.memory_space<vmem>>, vector<1x2xf32>
    tpu.vector_store %arg4[%c0_100, %c0_101], %305 {strides = array<i32>} : memref<1x2xf32, #tpu.memory_space<vmem>>, vector<1x2xf32>,
    return
  }
}

</mosaic_0001>

<bundles_post_ra>
// kernel: bert_ai_search_forward.1
= control target key start
LH: loop header
LB: loop body
LE: loop exit
PB: predicated region body
PF: predicated region fallthrough
CT: control target
= control target key end

     0   :  { %vm23_vm0 = vcmask 261120   ;;  %s1629_s0 = inlined_call_operand.vmem [shape: f32[16,32], index: 0, kind: input, shape index: {}]   ;;  %s1630_s1 = inlined_call_operand.vmem [shape: f32[16,16], index: 1, kind: input, shape index: {}]   ;;  %s1631_s2 = inlined_call_operand.vmem [shape: bf16[352,96], index: 2, kind: input, shape index: {}]   ;;  %s1632_s3 = inlined_call_operand.vmem [shape: f32[21,96], index: 3, kind: input, shape index: {}]   ;;  %s1633_s4 = inlined_call_operand.hbm [shape: f32[1,2], index: 4, kind: output, shape index: {}]  }
   0x1   :  { %v19_v0 = vld [vmem:[%s1629_s0] sm:$0xff]  ;;  %v20_v1 = vld [vmem:[%s1629_s0 + $0x8] sm:$0xff] }
   0x2   :  { %v24_v2 = vsel %vm23_vm0, %v19_v0, 0.0  ;;  %v27_v3 = vsel %vm23_vm0, %v20_v1, 0.0 }
   0x3   :  { %25 = vadd.xlane.f32.xlu0 %v24_v2 }
   0x4   :  { %9 = vsyncpa [#allocation3], 0  ;;  %v1320_v4 = vmov 32.0   ;;  %v1163_v21 = vld [vmem:[%s1631_s2 + $0x8] sm:$0xff]  ;;  %v1162_v23 = vld [vmem:[%s1631_s2] sm:$0xff]  ;;  %s1321_s28 = smov 112  }
   0x5   :  { %1226 = vrcp.f32 %v1320_v4  ;;  %111 = vmatpush.bf16.msra.mxu0 %v1163_v21  ;;  %v1205_v42 = vld [vmem:[%s1632_s3] ss:$0 sm:$0xff]  ;;  %v1206_v47 = vld [vmem:[%s1632_s3 + $0x1] ss:$0 sm:$0xff]  ;;  %v1207_v53 = vld [vmem:[%s1632_s3 + $0x2] ss:$0 sm:$0xff] }
   0x6   :  { %s1322_s29 = smov 96   ;;  %s1323_s30 = smov 80   ;;  %vm123_vm8 = vcmask 130048   ;;  %vm451_vm15 = vcmask 523264  }
   0x7   :  { %s1325_s9 = smov 48   ;;  %s1326_s12 = smov 16  }
   0x8   :  { %s1048_s10 = sshll.u32 %s1633_s4, 4  ;;  %s1049_s10 = int_to_ptr.hbm [resolvable:$true] %s1048_s10 }
   0x9   :  { %112 = vmatpush.bf16.msra.mxu0 %v1162_v23 }
   0xb   :  { %28 = vadd.xlane.f32.xlu0 %v27_v3  ;;  %v1227_v5 = vpop.eup %1226 }
   0xc   :  { %v31_v6 = vmul.f32 32.0, %v1227_v5  ;;  %vm35_vm1 = vweird.f32 %v1227_v5 }
   0xe   :  { %v32_v7 = vsub.f32 1.0, %v31_v6 }
  0x10   :  { %v33_v8 = vmul.f32 %v1227_v5, %v32_v7 }
  0x12   :  { %v34_v9 = vadd.f32 %v1227_v5, %v33_v8 }
  0x14   :  { %v1362_v10 = vsel %vm35_vm1, %v1227_v5, %v34_v9  ;;  %v1415_v5 = vld [vmem:[%s1630_s1 + $0x8] sm:$0xff] }
  0x76   :  { %v26_v11 = vpop.xlane.xlu0 %25 }
  0x77   :  { %v37_v12 = vmul.f32 %v1362_v10, %v26_v11 }
  0x79   :  { %v39_v13 = vsub.f32 %v19_v0, %v37_v12  ;;  %v1408_v0 = vld [vmem:[%s1630_s1] sm:$0xff]  ;;  %s1324_s1 = smov 64  }
  0x7b   :  { %v41_v14 = vmul.f32 %v39_v13, %v39_v13 }
  0x7d   :  { %v43_v15 = vsel %vm23_vm0, %v41_v14, 0.0 }
  0x7e   :  { %44 = vadd.xlane.f32.xlu1 %v43_v15  ;;  %v29_v16 = vpop.xlane.xlu0 %28 }
  0x7f   :  { %v38_v17 = vmul.f32 %v1362_v10, %v29_v16 }
  0x81   :  { %v40_v18 = vsub.f32 %v20_v1, %v38_v17 }
  0x83   :  { %v42_v19 = vmul.f32 %v40_v18, %v40_v18 }
  0x85   :  { %v46_v20 = vsel %vm23_vm0, %v42_v19, 0.0 }
  0x86   :  { %47 = vadd.xlane.f32.xlu1 %v46_v20 }
  0xf1   :  { %v45_v22 = vpop.xlane.xlu1 %44 }
  0xf2   :  { %v49_v24 = vmul.f32 %v45_v22, %v1362_v10 }
  0xf4   :  { %v51_v25 = vadd.f32 1e-12, %v49_v24 }
  0xf6   :  { %1228 = vrsqrt.f32 %v51_v25  ;;  %vm59_vm3 = vweird.f32 %v51_v25 }
  0xf9   :  { %v48_v26 = vpop.xlane.xlu1 %47 }
  0xfa   :  { %v50_v27 = vmul.f32 %v48_v26, %v1362_v10 }
  0xfc   :  { %v1229_v28 = vpop.eup %1228  ;;  %v52_v29 = vadd.f32 1e-12, %v50_v27 }
  0xfd   :  { %v54_v30 = vmul.f32 %v1229_v28, %v51_v25  ;;  %vm60_vm2 = vweird.f32 %v1229_v28 }
  0xfe   :  { %1230 = vrsqrt.f32 %v52_v29  ;;  %vm61_vm4 = vmor %vm59_vm3, %vm60_vm2  ;;  %vm69_vm6 = vweird.f32 %v52_v29 }
  0xff   :  { %v55_v31 = vmul.f32 %v1229_v28, %v54_v30 }
 0x101   :  { %v56_v32 = vmul.f32 0.5, %v55_v31 }
 0x103   :  { %v57_v33 = vsub.f32 1.5, %v56_v32 }
 0x104   :  { %v1231_v34 = vpop.eup %1230 }
 0x105   :  { %v58_v35 = vmul.f32 %v1229_v28, %v57_v33  ;;  %v64_v36 = vmul.f32 %v1231_v34, %v52_v29  ;;  %vm70_vm5 = vweird.f32 %v1231_v34 }
 0x106   :  { %vm71_vm7 = vmor %vm69_vm6, %vm70_vm5 }
 0x107   :  { %v65_v37 = vmul.f32 %v1231_v34, %v64_v36  ;;  %v62_v38 = vsel %vm61_vm4, %v1229_v28, %v58_v35 }
 0x108   :  { %v73_v41 = vmul.f32 %v62_v38, %v39_v13 }
 0x109   :  { %v66_v39 = vmul.f32 0.5, %v65_v37 }
 0x10a   :  { %v76_v46 = vmul.f32 %v1205_v42, %v73_v41 }
 0x10b   :  { %v67_v40 = vsub.f32 1.5, %v66_v39 }
 0x10c   :  { %v1382_v49 = vadd.f32 %v1206_v47, %v76_v46 }
 0x10d   :  { %v68_v43 = vmul.f32 %v1231_v34, %v67_v40 }
 0x10f   :  { %v72_v44 = vsel %vm71_vm7, %v1231_v34, %v68_v43 }
 0x110   :  { %v74_v45 = vmul.f32 %v72_v44, %v40_v18 }
 0x112   :  { %v77_v48 = vmul.f32 %v1205_v42, %v74_v45 }
 0x114   :  { %v1384_v50 = vadd.f32 %v1206_v47, %v77_v48 }
 0x116   :  { %v87_v51 = vpack.c.bf16 %v1384_v50, %v1382_v49 }
 0x118   :  { %1065 = vmatmul.msk.bf16.vlgmr.msra.gmra.mxu0 %vm23_vm0, %v87_v51 }
 0x195   :  { %v114_v52 = vpop.f32.mrf.mxu0 }
 0x196   :  { %v115_v55 = vadd.f32 %v1207_v53, %v114_v52 }
 0x19d   :  { %v116_v54 = vpop.f32.mrf.mxu0 }
 0x19e   :  { %v117_v56 = vadd.f32 %v1207_v53, %v116_v54 }
 0x1a0   :  { %v1392_v57 = vpack.c.bf16 %v117_v56, %v115_v55  ;;  %v1165_v56 = vld [vmem:[%s1631_s2 + $0x18] sm:$0xff] }
 0x1a1   :  { %300 = vmatpush.bf16.msrb.mxu0 %v1165_v56 }
 0x1a2   :  { %191 = vrot.lane.b32.xlu0 %v1392_v57, %s1321_s28  ;;  %121 = vrot.lane.b32.xlu2 %v1392_v57, %s1322_s29 }
 0x1aa   :  { %193 = vrot.lane.b32.xlu2 %v1392_v57, %s1323_s30 }
 0x1fc   :  { %v122_v58 = vpop.permute.xlu2 %121 }
 0x1fd   :  { %v128_v59 = vsel %vm123_vm8, %v122_v58, 0 }
 0x1fe   :  { %137 = vmatpush.bf16.xpose.msra.mxu1 %v128_v59 }
 0x204   :  { %v194_v60 = vpop.permute.xlu2 %193 }
 0x205   :  { %1066 = vmatmul.msk.bf16.vlgmr.msra.gmra.mxu1 %vm123_vm8, %v1392_v57  ;;  %v199_v61 = vsel %vm123_vm8, %v194_v60, 0 }
 0x206   :  { %208 = vmatpush.bf16.xpose.msra.mxu3 %v199_v61 }
 0x214   :  { %v192_v62 = vpop.permute.xlu0 %191 }
 0x215   :  { %1068 = vmatmul.msk.bf16.vlgmr.msra.gmra.mxu3 %vm123_vm8, %v192_v62  ;;  %v1164_v62 = vld [vmem:[%s1631_s2 + $0x10] sm:$0xff] }
 0x216   :  { %301 = vmatpush.bf16.msrb.mxu0 %v1164_v62  ;;  %v1211_v62 = vld [vmem:[%s1632_s3 + $0x6] ss:$0 sm:$0xff] }
 0x282   :  { %v139_v63 = vpop.f32.mrf.mxu1 }
 0x283   :  { %v144_v1 = vmul.f32 0.25, %v139_v63 }
 0x285   :  { %v146_v2 = vadd.f32 %v144_v1, %v1408_v0 }
 0x287   :  { %v148_v3 = vsel %vm123_vm8, %v146_v2, -inf }
 0x288   :  { %149 = vmax.xlane.f32.xlu1 %v148_v3 }
 0x28a   :  { %v141_v4 = vpop.f32.mrf.mxu1 }
 0x28b   :  { %v145_v6 = vmul.f32 0.25, %v141_v4 }
 0x28d   :  { %v147_v7 = vadd.f32 %v145_v6, %v1415_v5 }
 0x28f   :  { %v151_v8 = vsel %vm123_vm8, %v147_v7, -inf }
 0x290   :  { %152 = vmax.xlane.f32.xlu2 %v151_v8 }
 0x298   :  { %v210_v9 = vpop.f32.mrf.mxu3 }
 0x299   :  { %v215_v11 = vmul.f32 0.25, %v210_v9 }
 0x29b   :  { %v217_v12 = vadd.f32 %v215_v11, %v1408_v0 }
 0x29d   :  { %v219_v13 = vsel %vm123_vm8, %v217_v12, -inf }
 0x29e   :  { %220 = vmax.xlane.f32.xlu1 %v219_v13 }
 0x2a0   :  { %v212_v14 = vpop.f32.mrf.mxu3 }
 0x2a1   :  { %v216_v15 = vmul.f32 0.25, %v212_v14 }
 0x2a3   :  { %v218_v16 = vadd.f32 %v216_v15, %v1415_v5 }
 0x2a5   :  { %v222_v17 = vsel %vm123_vm8, %v218_v16, -inf }
 0x2a6   :  { %223 = vmax.xlane.f32.xlu1 %v222_v17 }
 0x2bf   :  { %171 = vrot.lane.b32.xlu1 %v1392_v57, %s1324_s1 }
 0x2fb   :  { %v150_v18 = vpop.xlane.xlu1 %149 }
 0x2fc   :  { %v154_v19 = vsub.f32 %v146_v2, %v150_v18 }
 0x2fe   :  { %v156_v20 = vmul.f32 1.442695, %v154_v19 }
 0x300   :  { %1232 = vpow2.f32 %v156_v20 }
 0x303   :  { %v153_v21 = vpop.xlane.xlu2 %152 }
 0x304   :  { %v155_v22 = vsub.f32 %v147_v7, %v153_v21  ;;  %v1208_v7 = vld [vmem:[%s1632_s3 + $0x3] ss:$0 sm:$0xff] }
 0x306   :  { %v1233_v23 = vpop.eup %1232  ;;  %v158_v24 = vmul.f32 1.442695, %v155_v22 }
 0x307   :  { %v160_v25 = vsel %vm123_vm8, %v1233_v23, 0.0 }
 0x308   :  { %1234 = vpow2.f32 %v158_v24  ;;  %161 = vadd.xlane.f32.xlu0 %v160_v25 }
 0x30e   :  { %v1235_v26 = vpop.eup %1234 }
 0x30f   :  { %v163_v27 = vsel %vm123_vm8, %v1235_v26, 0.0 }
 0x310   :  { %164 = vadd.xlane.f32.xlu1 %v163_v27  ;;  %v1166_v27 = vld [vmem:[%s1631_s2 + $0x20] sm:$0xff] }
 0x311   :  { %v221_v28 = vpop.xlane.xlu1 %220 }
 0x312   :  { %v225_v29 = vsub.f32 %v217_v12, %v221_v28 }
 0x314   :  { %v227_v30 = vmul.f32 1.442695, %v225_v29 }
 0x316   :  { %1236 = vpow2.f32 %v227_v30 }
 0x319   :  { %v224_v31 = vpop.xlane.xlu1 %223 }
 0x31a   :  { %v226_v32 = vsub.f32 %v218_v16, %v224_v31 }
 0x31c   :  { %v1237_v33 = vpop.eup %1236  ;;  %v229_v34 = vmul.f32 1.442695, %v226_v32 }
 0x31d   :  { %v231_v35 = vsel %vm123_vm8, %v1237_v33, 0.0 }
 0x31e   :  { %1238 = vpow2.f32 %v229_v34  ;;  %232 = vadd.xlane.f32.xlu2 %v231_v35 }
 0x324   :  { %v1239_v36 = vpop.eup %1238 }
 0x325   :  { %v234_v37 = vsel %vm123_vm8, %v1239_v36, 0.0 }
 0x326   :  { %235 = vadd.xlane.f32.xlu2 %v234_v37 }
 0x329   :  { %242 = vrot.lane.b32.xlu1 %v1392_v57, %s1325_s9 }
 0x331   :  { %v172_v38 = vpop.permute.xlu1 %171 }
 0x332   :  { %184 = vmatpush.bf16.msra.mxu2 %v172_v38 }
 0x37b   :  { %v162_v39 = vpop.xlane.xlu0 %161 }
 0x37c   :  { %1240 = vrcp.f32 %v162_v39 }
 0x382   :  { %v1241_v41 = vpop.eup %1240 }
 0x383   :  { %v165_v40 = vpop.xlane.xlu1 %164  ;;  %v168_v43 = vmul.f32 %v1241_v41, %v1233_v23 }
 0x384   :  { %1242 = vrcp.f32 %v165_v40 }
 0x38a   :  { %v1243_v42 = vpop.eup %1242 }
 0x38b   :  { %v169_v44 = vmul.f32 %v1243_v42, %v1235_v26 }
 0x38d   :  { %v170_v45 = vpack.c.bf16 %v169_v44, %v168_v43 }
 0x38f   :  { %1067 = vmatmul.msk.bf16.vlgmr.msra.gmra.mxu2 %vm123_vm8, %v170_v45 }
 0x391   :  { %v233_v46 = vpop.xlane.xlu2 %232 }
 0x392   :  { %1244 = vrcp.f32 %v233_v46  ;;  %v1209_v46 = vld [vmem:[%s1632_s3 + $0x4] ss:$0 sm:$0xff] }
 0x398   :  { %v1245_v51 = vpop.eup %1244 }
 0x399   :  { %v236_v47 = vpop.xlane.xlu2 %235  ;;  %v239_v53 = vmul.f32 %v1245_v51, %v1237_v33 }
 0x39a   :  { %1246 = vrcp.f32 %v236_v47 }
 0x39b   :  { %v243_v48 = vpop.permute.xlu1 %242 }
 0x39c   :  { %255 = vmatpush.bf16.msrb.mxu2 %v243_v48 }
 0x3a0   :  { %v1247_v52 = vpop.eup %1246 }
 0x3a1   :  { %v240_v54 = vmul.f32 %v1247_v52, %v1239_v36 }
 0x3a3   :  { %v241_v55 = vpack.c.bf16 %v240_v54, %v239_v53  ;;  %v1210_v53 = vld [vmem:[%s1632_s3 + $0x5] ss:$0 sm:$0xff] }
 0x3a5   :  { %1069 = vmatmul.msk.bf16.vlgmr.msrb.gmra.mxu2 %vm123_vm8, %v241_v55 }
 0x412   :  { %v186_v57 = vpop.f32.mrf.mxu2 }
 0x41a   :  { %v188_v58 = vpop.f32.mrf.mxu2 }
 0x428   :  { %v257_v59 = vpop.f32.mrf.mxu2 }
 0x430   :  { %v259_v60 = vpop.f32.mrf.mxu2 }
 0x431   :  { %v1193_v61 = vpack.i.bf16 %v259_v60, %v257_v59  ;;  %v1170_v59 = vld [vmem:[%s1631_s2 + $0x40] sm:$0xff]  ;;  %v1169_v60 = vld [vmem:[%s1631_s2 + $0x38] sm:$0xff] }
 0x433   :  { %1194 = vrot.lane.b32.xlu2 %v1193_v61, %s1326_s12  ;;  %v1168_v61 = vld [vmem:[%s1631_s2 + $0x30] sm:$0xff] }
 0x48d   :  { %v1195_v63 = vpop.permute.xlu2 %1194 }
 0x48e   :  { %v1197_v1 = vunpack.i.h.bf16 %v1195_v63  ;;  %v1196_v2 = vunpack.i.l.bf16 %v1195_v63 }
 0x490   :  { %v271_v3 = vsel %vm123_vm8, %v188_v58, %v1197_v1  ;;  %v270_v4 = vsel %vm123_vm8, %v186_v57, %v1196_v2  ;;  %v1171_v58 = vld [vmem:[%s1631_s2 + $0x48] sm:$0xff] }
 0x491   :  { %v276_v6 = vpack.c.bf16 %v271_v3, %v270_v4  ;;  %459 = vmatpush.bf16.msrb.mxu3 %v1171_v58 }
 0x493   :  { %1078 = vmatmul.msk.bf16.vlgmr.msrb.gmra.mxu0 %vm23_vm0, %v276_v6 }
 0x495   :  { %460 = vmatpush.bf16.msrb.mxu3 %v1170_v59 }
 0x499   :  { %461 = vmatpush.bf16.msrb.mxu3 %v1169_v60 }
 0x49d   :  { %462 = vmatpush.bf16.msrb.mxu3 %v1168_v61 }
 0x510   :  { %v303_v8 = vpop.f32.mrf.mxu0 }
 0x511   :  { %v304_v9 = vadd.f32 %v1208_v7, %v303_v8 }
 0x513   :  { %v308_v11 = vadd.f32 %v304_v9, %v1382_v49 }
 0x515   :  { %v312_v12 = vsel %vm23_vm0, %v308_v11, 0.0 }
 0x516   :  { %313 = vadd.xlane.f32.xlu0 %v312_v12 }
 0x518   :  { %v305_v13 = vpop.f32.mrf.mxu0 }
 0x519   :  { %v306_v14 = vadd.f32 %v1208_v7, %v305_v13 }
 0x51b   :  { %v309_v15 = vadd.f32 %v306_v14, %v1384_v50  ;;  %v1167_v50 = vld [vmem:[%s1631_s2 + $0x28] sm:$0xff] }
 0x51c   :  { %390 = vmatpush.bf16.msrb.mxu1 %v1167_v50 }
 0x51d   :  { %v315_v16 = vsel %vm23_vm0, %v309_v15, 0.0 }
 0x51e   :  { %316 = vadd.xlane.f32.xlu1 %v315_v16 }
 0x520   :  { %391 = vmatpush.bf16.msrb.mxu1 %v1166_v27 }
 0x589   :  { %v314_v17 = vpop.xlane.xlu0 %313 }
 0x58a   :  { %v318_v18 = vmul.f32 %v314_v17, %v1362_v10 }
 0x58c   :  { %v320_v19 = vsub.f32 %v308_v11, %v318_v18 }
 0x58e   :  { %v322_v20 = vmul.f32 %v320_v19, %v320_v19 }
 0x590   :  { %v324_v21 = vsel %vm23_vm0, %v322_v20, 0.0 }
 0x591   :  { %v317_v22 = vpop.xlane.xlu1 %316  ;;  %325 = vadd.xlane.f32.xlu0 %v324_v21 }
 0x592   :  { %v319_v49 = vmul.f32 %v317_v22, %v1362_v10 }
 0x594   :  { %v321_v23 = vsub.f32 %v309_v15, %v319_v49 }
 0x596   :  { %v323_v24 = vmul.f32 %v321_v23, %v321_v23 }
 0x598   :  { %v327_v25 = vsel %vm23_vm0, %v323_v24, 0.0  ;;  %v1212_v24 = vld [vmem:[%s1632_s3 + $0x7] ss:$0 sm:$0xff] }
 0x599   :  { %328 = vadd.xlane.f32.xlu0 %v327_v25 }
 0x604   :  { %v326_v26 = vpop.xlane.xlu0 %325 }
 0x605   :  { %v330_v28 = vmul.f32 %v326_v26, %v1362_v10 }
 0x607   :  { %v332_v29 = vadd.f32 1e-12, %v330_v28 }
 0x609   :  { %1248 = vrsqrt.f32 %v332_v29  ;;  %vm340_vm10 = vweird.f32 %v332_v29 }
 0x60c   :  { %v329_v30 = vpop.xlane.xlu0 %328 }
 0x60d   :  { %v331_v31 = vmul.f32 %v329_v30, %v1362_v10 }
 0x60f   :  { %v1249_v32 = vpop.eup %1248  ;;  %v333_v33 = vadd.f32 1e-12, %v331_v31 }
 0x610   :  { %v335_v34 = vmul.f32 %v1249_v32, %v332_v29  ;;  %vm341_vm9 = vweird.f32 %v1249_v32 }
 0x611   :  { %1250 = vrsqrt.f32 %v333_v33  ;;  %vm342_vm11 = vmor %vm340_vm10, %vm341_vm9  ;;  %vm350_vm13 = vweird.f32 %v333_v33 }
 0x612   :  { %v336_v35 = vmul.f32 %v1249_v32, %v335_v34 }
 0x614   :  { %v337_v36 = vmul.f32 0.5, %v336_v35 }
 0x616   :  { %v338_v37 = vsub.f32 1.5, %v337_v36 }
 0x617   :  { %v1251_v38 = vpop.eup %1250 }
 0x618   :  { %v339_v39 = vmul.f32 %v1249_v32, %v338_v37  ;;  %v345_v40 = vmul.f32 %v1251_v38, %v333_v33  ;;  %vm351_vm12 = vweird.f32 %v1251_v38 }
 0x619   :  { %vm352_vm14 = vmor %vm350_vm13, %vm351_vm12 }
 0x61a   :  { %v346_v41 = vmul.f32 %v1251_v38, %v345_v40  ;;  %v343_v42 = vsel %vm342_vm11, %v1249_v32, %v339_v39 }
 0x61b   :  { %v354_v45 = vmul.f32 %v343_v42, %v320_v19  ;;  %v1173_v42 = vld [vmem:[%s1631_s2 + $0x58] sm:$0xff] }
 0x61c   :  { %v347_v43 = vmul.f32 0.5, %v346_v41  ;;  %551 = vmatpush.bf16.msra.mxu2 %v1173_v42 }
 0x61d   :  { %v357_v52 = vmul.f32 %v1209_v46, %v354_v45  ;;  %v1172_v45 = vld [vmem:[%s1631_s2 + $0x50] sm:$0xff] }
 0x61e   :  { %v348_v44 = vsub.f32 1.5, %v347_v43 }
 0x61f   :  { %v360_v55 = vadd.f32 %v1210_v53, %v357_v52 }
 0x620   :  { %v349_v47 = vmul.f32 %v1251_v38, %v348_v44  ;;  %552 = vmatpush.bf16.msra.mxu2 %v1172_v45 }
 0x622   :  { %v353_v48 = vsel %vm352_vm14, %v1251_v38, %v349_v47 }
 0x623   :  { %v355_v51 = vmul.f32 %v353_v48, %v321_v23 }
 0x625   :  { %v358_v54 = vmul.f32 %v1209_v46, %v355_v51 }
 0x627   :  { %v361_v56 = vadd.f32 %v1210_v53, %v358_v54 }
 0x629   :  { %v366_v57 = vpack.c.bf16 %v361_v56, %v360_v55 }
 0x62b   :  { %1087 = vmatmul.msk.bf16.vlgmr.msrb.gmra.mxu1 %vm23_vm0, %v366_v57 }
 0x6a8   :  { %v393_v63 = vpop.f32.mrf.mxu1 }
 0x6a9   :  { %v394_v1 = vadd.f32 %v1211_v62, %v393_v63 }
 0x6ab   :  { %v400_v2 = vmul.f32 0.044715, %v394_v1  ;;  %v398_v19 = vmul.f32 0.5, %v394_v1 }
 0x6ad   :  { %v402_v3 = vmul.f32 %v400_v2, %v394_v1 }
 0x6af   :  { %v404_v4 = vmul.f32 %v402_v3, %v394_v1 }
 0x6b0   :  { %v395_v6 = vpop.f32.mrf.mxu1 }
 0x6b1   :  { %v406_v7 = vadd.f32 %v404_v4, %v394_v1  ;;  %v396_v8 = vadd.f32 %v1211_v62, %v395_v6  ;;  %v1213_v1 = vld [vmem:[%s1632_s3 + $0x8] ss:$0 sm:$0xff]  ;;  %v1214_v6 = vld [vmem:[%s1632_s3 + $0x9] ss:$0 sm:$0xff] }
 0x6b3   :  { %v401_v9 = vmul.f32 0.044715, %v396_v8  ;;  %v408_v11 = vmul.f32 0.7978846, %v406_v7  ;;  %v399_v20 = vmul.f32 0.5, %v396_v8 }
 0x6b5   :  { %v403_v12 = vmul.f32 %v401_v9, %v396_v8  ;;  %1252 = vtanh.f32 %v408_v11 }
 0x6b7   :  { %v405_v13 = vmul.f32 %v403_v12, %v396_v8 }
 0x6b9   :  { %v407_v14 = vadd.f32 %v405_v13, %v396_v8 }
 0x6bb   :  { %v409_v15 = vmul.f32 0.7978846, %v407_v14  ;;  %v1253_v16 = vpop.eup %1252 }
 0x6bc   :  { %v412_v17 = vadd.f32 1.0, %v1253_v16 }
 0x6bd   :  { %1254 = vtanh.f32 %v409_v15  ;;  %v1215_v15 = vld [vmem:[%s1632_s3 + $0xa] ss:$0 sm:$0xff] }
 0x6be   :  { %v414_v22 = vmul.f32 %v412_v17, %v398_v19 }
 0x6c3   :  { %v1255_v18 = vpop.eup %1254 }
 0x6c4   :  { %v413_v21 = vadd.f32 1.0, %v1255_v18 }
 0x6c6   :  { %v415_v49 = vmul.f32 %v413_v21, %v399_v20 }
 0x6c8   :  { %v424_v23 = vpack.c.bf16 %v415_v49, %v414_v22 }
 0x6ca   :  { %1104 = vmatmul.msk.bf16.vlgmr.msrb.gmra.mxu3 %vm451_vm15, %v424_v23 }
 0x74d   :  { %v464_v25 = vpop.f32.mrf.mxu3 }
 0x74e   :  { %v465_v50 = vadd.f32 %v1212_v24, %v464_v25 }
 0x750   :  { %v469_v26 = vadd.f32 %v465_v50, %v360_v55 }
 0x752   :  { %v473_v27 = vsel %vm23_vm0, %v469_v26, 0.0 }
 0x753   :  { %474 = vadd.xlane.f32.xlu2 %v473_v27 }
 0x755   :  { %v466_v28 = vpop.f32.mrf.mxu3 }
 0x756   :  { %v467_v29 = vadd.f32 %v1212_v24, %v466_v28 }
 0x758   :  { %v470_v30 = vadd.f32 %v467_v29, %v361_v56 }
 0x75a   :  { %v476_v31 = vsel %vm23_vm0, %v470_v30, 0.0 }
 0x75b   :  { %477 = vadd.xlane.f32.xlu0 %v476_v31 }
 0x7c6   :  { %v475_v32 = vpop.xlane.xlu2 %474 }
 0x7c7   :  { %v479_v33 = vmul.f32 %v475_v32, %v1362_v10 }
 0x7c9   :  { %v481_v34 = vsub.f32 %v469_v26, %v479_v33 }
 0x7cb   :  { %v483_v35 = vmul.f32 %v481_v34, %v481_v34 }
 0x7cd   :  { %v485_v36 = vsel %vm23_vm0, %v483_v35, 0.0 }
 0x7ce   :  { %v478_v37 = vpop.xlane.xlu0 %477  ;;  %486 = vadd.xlane.f32.xlu0 %v485_v36 }
 0x7cf   :  { %v480_v38 = vmul.f32 %v478_v37, %v1362_v10 }
 0x7d1   :  { %v482_v39 = vsub.f32 %v470_v30, %v480_v38 }
 0x7d3   :  { %v484_v40 = vmul.f32 %v482_v39, %v482_v39 }
 0x7d5   :  { %v488_v41 = vsel %vm23_vm0, %v484_v40, 0.0 }
 0x7d6   :  { %489 = vadd.xlane.f32.xlu0 %v488_v41 }
 0x841   :  { %v487_v43 = vpop.xlane.xlu0 %486 }
 0x842   :  { %v491_v44 = vmul.f32 %v487_v43, %v1362_v10 }
 0x844   :  { %v493_v46 = vadd.f32 1e-12, %v491_v44 }
 0x846   :  { %1256 = vrsqrt.f32 %v493_v46  ;;  %vm501_vm2 = vweird.f32 %v493_v46 }
 0x849   :  { %v490_v47 = vpop.xlane.xlu0 %489 }
 0x84a   :  { %v492_v48 = vmul.f32 %v490_v47, %v1362_v10 }
 0x84c   :  { %v1257_v51 = vpop.eup %1256  ;;  %v494_v52 = vadd.f32 1e-12, %v492_v48 }
 0x84d   :  { %v496_v53 = vmul.f32 %v1257_v51, %v493_v46  ;;  %vm502_vm1 = vweird.f32 %v1257_v51 }
 0x84e   :  { %1258 = vrsqrt.f32 %v494_v52  ;;  %vm503_vm3 = vmor %vm501_vm2, %vm502_vm1  ;;  %vm511_vm5 = vweird.f32 %v494_v52 }
 0x84f   :  { %v497_v54 = vmul.f32 %v1257_v51, %v496_v53 }
 0x851   :  { %v498_v55 = vmul.f32 0.5, %v497_v54 }
 0x853   :  { %v499_v56 = vsub.f32 1.5, %v498_v55 }
 0x854   :  { %v1259_v57 = vpop.eup %1258 }
 0x855   :  { %v500_v58 = vmul.f32 %v1257_v51, %v499_v56  ;;  %v506_v59 = vmul.f32 %v1259_v57, %v494_v52  ;;  %vm512_vm4 = vweird.f32 %v1259_v57 }
 0x856   :  { %vm513_vm6 = vmor %vm511_vm5, %vm512_vm4  ;;  %vm964_vm4 = vcmask 1040384   ;;  %vm1005_vm5 = vcmask 254976  }
 0x857   :  { %v507_v60 = vmul.f32 %v1259_v57, %v506_v59  ;;  %v504_v61 = vsel %vm503_vm3, %v1257_v51, %v500_v58 }
 0x858   :  { %v515_v2 = vmul.f32 %v504_v61, %v481_v34 }
 0x859   :  { %v508_v62 = vmul.f32 0.5, %v507_v60 }
 0x85a   :  { %v518_v7 = vmul.f32 %v1213_v1, %v515_v2 }
 0x85b   :  { %v509_v63 = vsub.f32 1.5, %v508_v62 }
 0x85c   :  { %v1508_v11 = vadd.f32 %v1214_v6, %v518_v7 }
 0x85d   :  { %v510_v3 = vmul.f32 %v1259_v57, %v509_v63 }
 0x85f   :  { %v514_v4 = vsel %vm513_vm6, %v1259_v57, %v510_v3 }
 0x860   :  { %v516_v8 = vmul.f32 %v514_v4, %v482_v39 }
 0x862   :  { %v519_v9 = vmul.f32 %v1213_v1, %v516_v8 }
 0x864   :  { %v1510_v12 = vadd.f32 %v1214_v6, %v519_v9 }
 0x866   :  { %v527_v13 = vpack.c.bf16 %v1510_v12, %v1508_v11 }
 0x868   :  { %1113 = vmatmul.msk.bf16.vlgmr.msra.gmra.mxu2 %vm23_vm0, %v527_v13 }
 0x8eb   :  { %v554_v14 = vpop.f32.mrf.mxu2 }
 0x8ec   :  { %v555_v17 = vadd.f32 %v1215_v15, %v554_v14 }
 0x8f3   :  { %v556_v16 = vpop.f32.mrf.mxu2 }
 0x8f4   :  { %v557_v18 = vadd.f32 %v1215_v15, %v556_v16  ;;  %v1175_v16 = vld [vmem:[%s1631_s2 + $0x68] sm:$0xff] }
 0x8f6   :  { %v559_v19 = vpack.c.bf16 %v557_v18, %v555_v17 }
 0x8f8   :  { %561 = vrot.lane.b32.xlu2 %v559_v19, %s1322_s29  ;;  %630 = vrot.lane.b32.xlu0 %v559_v19, %s1321_s28 }
 0x8f9   :  { %632 = vrot.lane.b32.xlu1 %v559_v19, %s1323_s30 }
 0x952   :  { %v562_v20 = vpop.permute.xlu2 %561 }
 0x953   :  { %v567_v21 = vsel %vm123_vm8, %v562_v20, 0  ;;  %v1174_v20 = vld [vmem:[%s1631_s2 + $0x60] sm:$0xff] }
 0x954   :  { %576 = vmatpush.bf16.xpose.msra.mxu0 %v567_v21 }
 0x95b   :  { %1114 = vmatmul.msk.bf16.vlgmr.msra.gmra.mxu0 %vm123_vm8, %v559_v19 }
 0x95c   :  { %739 = vmatpush.bf16.msrb.mxu0 %v1175_v16  ;;  %v1181_v16 = vld [vmem:[%s1631_s2 + $0x98] sm:$0xff] }
 0x960   :  { %740 = vmatpush.bf16.msrb.mxu0 %v1174_v20  ;;  %v1219_v20 = vld [vmem:[%s1632_s3 + $0xe] ss:$0 sm:$0xff] }
 0x96a   :  { %v631_v23 = vpop.permute.xlu0 %630 }
 0x96b   :  { %v633_v22 = vpop.permute.xlu1 %632 }
 0x96c   :  { %v638_v49 = vsel %vm123_vm8, %v633_v22, 0 }
 0x96d   :  { %647 = vmatpush.bf16.xpose.msra.mxu3 %v638_v49 }
 0x974   :  { %1116 = vmatmul.msk.bf16.vlgmr.msra.gmra.mxu3 %vm123_vm8, %v631_v23 }
 0x975   :  { %897 = vmatpush.bf16.msrb.mxu3 %v1181_v16 }
 0x9d8   :  { %v578_v24 = vpop.f32.mrf.mxu0 }
 0x9d9   :  { %v583_v25 = vmul.f32 0.25, %v578_v24 }
 0x9db   :  { %v585_v50 = vadd.f32 %v583_v25, %v1408_v0 }
 0x9dd   :  { %v587_v26 = vsel %vm123_vm8, %v585_v50, -inf }
 0x9de   :  { %588 = vmax.xlane.f32.xlu2 %v587_v26 }
 0x9e0   :  { %v580_v29 = vpop.f32.mrf.mxu0 }
 0x9e1   :  { %v584_v31 = vmul.f32 0.25, %v580_v29 }
 0x9e3   :  { %v586_v35 = vadd.f32 %v584_v31, %v1415_v5 }
 0x9e5   :  { %v590_v37 = vsel %vm123_vm8, %v586_v35, -inf }
 0x9f7   :  { %v649_v27 = vpop.f32.mrf.mxu3 }
 0x9f8   :  { %v654_v28 = vmul.f32 0.25, %v649_v27  ;;  %v1216_v27 = vld [vmem:[%s1632_s3 + $0xb] ss:$0 sm:$0xff] }
 0x9fa   :  { %v656_v30 = vadd.f32 %v654_v28, %v1408_v0 }
 0x9fc   :  { %v658_v32 = vsel %vm123_vm8, %v656_v30, -inf }
 0x9fd   :  { %659 = vmax.xlane.f32.xlu0 %v658_v32 }
 0x9ff   :  { %v651_v33 = vpop.f32.mrf.mxu3 }
 0xa00   :  { %v655_v34 = vmul.f32 0.25, %v651_v33 }
 0xa02   :  { %v657_v36 = vadd.f32 %v655_v34, %v1415_v5 }
 0xa04   :  { %v661_v38 = vsel %vm123_vm8, %v657_v36, -inf }
 0xa05   :  { %591 = vmax.xlane.f32.xlu0 %v590_v37  ;;  %662 = vmax.xlane.f32.xlu1 %v661_v38 }
 0xa51   :  { %v589_v39 = vpop.xlane.xlu2 %588 }
 0xa52   :  { %v593_v40 = vsub.f32 %v585_v50, %v589_v39 }
 0xa54   :  { %v595_v41 = vmul.f32 1.442695, %v593_v40 }
 0xa56   :  { %1260 = vpow2.f32 %v595_v41 }
 0xa5c   :  { %v1261_v0 = vpop.eup %1260 }
 0xa5d   :  { %v599_v42 = vsel %vm123_vm8, %v1261_v0, 0.0 }
 0xa5e   :  { %600 = vadd.xlane.f32.xlu2 %v599_v42 }
 0xa70   :  { %v660_v43 = vpop.xlane.xlu0 %659 }
 0xa71   :  { %v664_v44 = vsub.f32 %v656_v30, %v660_v43 }
 0xa73   :  { %v666_v45 = vmul.f32 1.442695, %v664_v44 }
 0xa75   :  { %1262 = vpow2.f32 %v666_v45 }
 0xa76   :  { %610 = vrot.lane.b32.xlu2 %v559_v19, %s1324_s1 }
 0xa78   :  { %v663_v5 = vpop.xlane.xlu1 %662  ;;  %v592_v46 = vpop.xlane.xlu0 %591 }
 0xa79   :  { %v665_v47 = vsub.f32 %v657_v36, %v663_v5  ;;  %v594_v52 = vsub.f32 %v586_v35, %v592_v46  ;;  %v1176_v46 = vld [vmem:[%s1631_s2 + $0x70] sm:$0xff] }
 0xa7b   :  { %v1263_v48 = vpop.eup %1262  ;;  %v668_v51 = vmul.f32 1.442695, %v665_v47  ;;  %v597_v54 = vmul.f32 1.442695, %v594_v52 }
 0xa7c   :  { %v670_v53 = vsel %vm123_vm8, %v1263_v48, 0.0 }
 0xa7d   :  { %671 = vadd.xlane.f32.xlu1 %v670_v53  ;;  %1264 = vpow2.f32 %v668_v51 }
 0xa7e   :  { %1266 = vpow2.f32 %v597_v54 }
 0xa83   :  { %v1265_v55 = vpop.eup %1264 }
 0xa84   :  { %v673_v56 = vsel %vm123_vm8, %v1265_v55, 0.0  ;;  %v1267_v57 = vpop.eup %1266 }
 0xa85   :  { %674 = vadd.xlane.f32.xlu0 %v673_v56  ;;  %v602_v58 = vsel %vm123_vm8, %v1267_v57, 0.0 }
 0xa8d   :  { %603 = vadd.xlane.f32.xlu0 %v602_v58 }
 0xa96   :  { %681 = vrot.lane.b32.xlu1 %v559_v19, %s1325_s9 }
 0xad1   :  { %v601_v59 = vpop.xlane.xlu2 %600 }
 0xad9   :  { %v611_v60 = vpop.permute.xlu2 %610 }
 0xada   :  { %623 = vmatpush.bf16.msra.mxu1 %v611_v60 }
 0xaf0   :  { %v672_v62 = vpop.xlane.xlu1 %671 }
 0xaf8   :  { %v675_v61 = vpop.xlane.xlu0 %674 }
 0xaf9   :  { %1268 = vrcp.f32 %v675_v61 }
 0xafa   :  { %1270 = vrcp.f32 %v672_v62 }
 0xafb   :  { %1272 = vrcp.f32 %v601_v59 }
 0xaff   :  { %v1269_v1 = vpop.eup %1268 }
 0xb00   :  { %v604_v63 = vpop.xlane.xlu0 %603  ;;  %v1271_v2 = vpop.eup %1270  ;;  %v679_v4 = vmul.f32 %v1269_v1, %v1265_v55  ;;  %v1217_v1 = vld [vmem:[%s1632_s3 + $0xc] ss:$0 sm:$0xff] }
 0xb01   :  { %1274 = vrcp.f32 %v604_v63  ;;  %v1273_v3 = vpop.eup %1272  ;;  %v678_v7 = vmul.f32 %v1271_v2, %v1263_v48 }
 0xb02   :  { %v607_v9 = vmul.f32 %v1273_v3, %v1261_v0 }
 0xb03   :  { %v680_v14 = vpack.c.bf16 %v679_v4, %v678_v7 }
 0xb07   :  { %v1275_v6 = vpop.eup %1274 }
 0xb08   :  { %v682_v8 = vpop.permute.xlu1 %681  ;;  %v608_v13 = vmul.f32 %v1275_v6, %v1267_v57  ;;  %v1218_v6 = vld [vmem:[%s1632_s3 + $0xd] ss:$0 sm:$0xff] }
 0xb09   :  { %694 = vmatpush.bf16.msrb.mxu2 %v682_v8 }
 0xb0a   :  { %v609_v15 = vpack.c.bf16 %v608_v13, %v607_v9 }
 0xb0c   :  { %1117 = vmatmul.msk.bf16.vlgmr.msrb.gmra.mxu2 %vm123_vm8, %v680_v14  ;;  %1115 = vmatmul.msk.bf16.vlgmr.msra.gmra.mxu1 %vm123_vm8, %v609_v15 }
 0xb89   :  { %v625_v21 = vpop.f32.mrf.mxu1 }
 0xb8f   :  { %v696_v17 = vpop.f32.mrf.mxu2 }
 0xb91   :  { %v627_v24 = vpop.f32.mrf.mxu1 }
 0xb97   :  { %v698_v18 = vpop.f32.mrf.mxu2 }
 0xb98   :  { %v1198_v19 = vpack.i.bf16 %v698_v18, %v696_v17  ;;  %v1180_v17 = vld [vmem:[%s1631_s2 + $0x90] sm:$0xff]  ;;  %v1179_v18 = vld [vmem:[%s1631_s2 + $0x88] sm:$0xff] }
 0xb99   :  { %898 = vmatpush.bf16.msrb.mxu3 %v1180_v17 }
 0xb9a   :  { %1199 = vrot.lane.b32.xlu0 %v1198_v19, %s1326_s12  ;;  %v1178_v19 = vld [vmem:[%s1631_s2 + $0x80] sm:$0xff] }
 0xb9d   :  { %899 = vmatpush.bf16.msrb.mxu3 %v1179_v18 }
 0xba1   :  { %900 = vmatpush.bf16.msrb.mxu3 %v1178_v19 }
 0xc0c   :  { %v1200_v22 = vpop.permute.xlu0 %1199 }
 0xc0d   :  { %v1202_v49 = vunpack.i.h.bf16 %v1200_v22  ;;  %v1201_v23 = vunpack.i.l.bf16 %v1200_v22 }
 0xc0f   :  { %v710_v25 = vsel %vm123_vm8, %v627_v24, %v1202_v49  ;;  %v709_v50 = vsel %vm123_vm8, %v625_v21, %v1201_v23 }
 0xc10   :  { %v715_v26 = vpack.c.bf16 %v710_v25, %v709_v50 }
 0xc12   :  { %1126 = vmatmul.msk.bf16.vlgmr.msrb.gmra.mxu0 %vm23_vm0, %v715_v26 }
 0xc8f   :  { %v742_v28 = vpop.f32.mrf.mxu0 }
 0xc90   :  { %v743_v29 = vadd.f32 %v1216_v27, %v742_v28 }
 0xc92   :  { %v747_v30 = vadd.f32 %v743_v29, %v1508_v11 }
 0xc94   :  { %v751_v31 = vsel %vm23_vm0, %v747_v30, 0.0 }
 0xc95   :  { %752 = vadd.xlane.f32.xlu1 %v751_v31 }
 0xc97   :  { %v744_v32 = vpop.f32.mrf.mxu0 }
 0xc98   :  { %v745_v33 = vadd.f32 %v1216_v27, %v744_v32 }
 0xc9a   :  { %v748_v34 = vadd.f32 %v745_v33, %v1510_v12  ;;  %v1177_v12 = vld [vmem:[%s1631_s2 + $0x78] sm:$0xff] }
 0xc9b   :  { %829 = vmatpush.bf16.msrb.mxu1 %v1177_v12 }
 0xc9c   :  { %v754_v35 = vsel %vm23_vm0, %v748_v34, 0.0 }
 0xc9d   :  { %755 = vadd.xlane.f32.xlu0 %v754_v35 }
 0xc9f   :  { %830 = vmatpush.bf16.msrb.mxu1 %v1176_v46 }
 0xd08   :  { %v753_v36 = vpop.xlane.xlu1 %752 }
 0xd09   :  { %v757_v37 = vmul.f32 %v753_v36, %v1362_v10 }
 0xd0b   :  { %v759_v38 = vsub.f32 %v747_v30, %v757_v37 }
 0xd0d   :  { %v761_v39 = vmul.f32 %v759_v38, %v759_v38 }
 0xd0f   :  { %v763_v40 = vsel %vm23_vm0, %v761_v39, 0.0 }
 0xd10   :  { %v756_v41 = vpop.xlane.xlu0 %755  ;;  %764 = vadd.xlane.f32.xlu2 %v763_v40 }
 0xd11   :  { %v758_v11 = vmul.f32 %v756_v41, %v1362_v10 }
 0xd13   :  { %v760_v0 = vsub.f32 %v748_v34, %v758_v11  ;;  %v1220_v11 = vld [vmem:[%s1632_s3 + $0xf] ss:$0 sm:$0xff] }
 0xd15   :  { %v762_v42 = vmul.f32 %v760_v0, %v760_v0 }
 0xd17   :  { %v766_v43 = vsel %vm23_vm0, %v762_v42, 0.0 }
 0xd18   :  { %767 = vadd.xlane.f32.xlu1 %v766_v43 }
 0xd83   :  { %v765_v44 = vpop.xlane.xlu2 %764 }
 0xd84   :  { %v769_v45 = vmul.f32 %v765_v44, %v1362_v10 }
 0xd86   :  { %v771_v5 = vadd.f32 1e-12, %v769_v45 }
 0xd88   :  { %1276 = vrsqrt.f32 %v771_v5  ;;  %vm779_vm8 = vweird.f32 %v771_v5 }
 0xd8b   :  { %v768_v47 = vpop.xlane.xlu1 %767 }
 0xd8c   :  { %v770_v48 = vmul.f32 %v768_v47, %v1362_v10 }
 0xd8e   :  { %v1277_v51 = vpop.eup %1276  ;;  %v772_v52 = vadd.f32 1e-12, %v770_v48 }
 0xd8f   :  { %v774_v53 = vmul.f32 %v1277_v51, %v771_v5  ;;  %vm780_vm7 = vweird.f32 %v1277_v51 }
 0xd90   :  { %1278 = vrsqrt.f32 %v772_v52  ;;  %vm781_vm9 = vmor %vm779_vm8, %vm780_vm7  ;;  %vm789_vm11 = vweird.f32 %v772_v52 }
 0xd91   :  { %v775_v54 = vmul.f32 %v1277_v51, %v774_v53 }
 0xd93   :  { %v776_v55 = vmul.f32 0.5, %v775_v54 }
 0xd95   :  { %v777_v56 = vsub.f32 1.5, %v776_v55 }
 0xd96   :  { %v1279_v57 = vpop.eup %1278 }
 0xd97   :  { %v778_v58 = vmul.f32 %v1277_v51, %v777_v56  ;;  %v784_v59 = vmul.f32 %v1279_v57, %v772_v52  ;;  %vm790_vm10 = vweird.f32 %v1279_v57 }
 0xd98   :  { %vm791_vm12 = vmor %vm789_vm11, %vm790_vm10 }
 0xd99   :  { %v785_v60 = vmul.f32 %v1279_v57, %v784_v59  ;;  %v782_v61 = vsel %vm781_vm9, %v1277_v51, %v778_v58  ;;  %vm1039_vm9 = vcmask 8192  }
 0xd9a   :  { %v793_v2 = vmul.f32 %v782_v61, %v759_v38  ;;  %v1183_v61 = vld [vmem:[%s1631_s2 + $0xa8] sm:$0xff] }
 0xd9b   :  { %v786_v62 = vmul.f32 0.5, %v785_v60  ;;  %994 = vmatpush.bf16.msra.mxu2 %v1183_v61 }
 0xd9c   :  { %v796_v7 = vmul.f32 %v1217_v1, %v793_v2 }
 0xd9d   :  { %v787_v63 = vsub.f32 1.5, %v786_v62 }
 0xd9e   :  { %v799_v13 = vadd.f32 %v1218_v6, %v796_v7 }
 0xd9f   :  { %v788_v3 = vmul.f32 %v1279_v57, %v787_v63  ;;  %v1182_v63 = vld [vmem:[%s1631_s2 + $0xa0] sm:$0xff] }
 0xda0   :  { %995 = vmatpush.bf16.msra.mxu2 %v1182_v63 }
 0xda1   :  { %v792_v4 = vsel %vm791_vm12, %v1279_v57, %v788_v3 }
 0xda2   :  { %v794_v8 = vmul.f32 %v792_v4, %v760_v0 }
 0xda4   :  { %v797_v9 = vmul.f32 %v1217_v1, %v794_v8 }
 0xda6   :  { %v800_v14 = vadd.f32 %v1218_v6, %v797_v9 }
 0xda8   :  { %v805_v15 = vpack.c.bf16 %v800_v14, %v799_v13 }
 0xdaa   :  { %1135 = vmatmul.msk.bf16.vlgmr.msrb.gmra.mxu1 %vm23_vm0, %v805_v15 }
 0xe27   :  { %v832_v21 = vpop.f32.mrf.mxu1 }
 0xe28   :  { %v833_v22 = vadd.f32 %v1219_v20, %v832_v21 }
 0xe2a   :  { %v839_v49 = vmul.f32 0.044715, %v833_v22  ;;  %v837_v36 = vmul.f32 0.5, %v833_v22 }
 0xe2c   :  { %v841_v23 = vmul.f32 %v839_v49, %v833_v22 }
 0xe2e   :  { %v843_v24 = vmul.f32 %v841_v23, %v833_v22  ;;  %v1222_v23 = vld [vmem:[%s1632_s3 + $0x11] ss:$0 sm:$0xff] }
 0xe2f   :  { %v834_v25 = vpop.f32.mrf.mxu1 }
 0xe30   :  { %v845_v50 = vadd.f32 %v843_v24, %v833_v22  ;;  %v835_v26 = vadd.f32 %v1219_v20, %v834_v25 }
 0xe32   :  { %v840_v27 = vmul.f32 0.044715, %v835_v26  ;;  %v847_v28 = vmul.f32 0.7978846, %v845_v50  ;;  %v838_v37 = vmul.f32 0.5, %v835_v26 }
 0xe34   :  { %v842_v29 = vmul.f32 %v840_v27, %v835_v26  ;;  %1280 = vtanh.f32 %v847_v28 }
 0xe36   :  { %v844_v30 = vmul.f32 %v842_v29, %v835_v26 }
 0xe38   :  { %v846_v31 = vadd.f32 %v844_v30, %v835_v26  ;;  %v1223_v30 = vld [vmem:[%s1632_s3 + $0x12] ss:$0 sm:$0xff] }
 0xe3a   :  { %v848_v32 = vmul.f32 0.7978846, %v846_v31  ;;  %v1281_v33 = vpop.eup %1280 }
 0xe3b   :  { %v851_v34 = vadd.f32 1.0, %v1281_v33  ;;  %v1224_v33 = vld [vmem:[%s1632_s3 + $0x13] ss:$0 sm:$0xff] }
 0xe3c   :  { %1282 = vtanh.f32 %v848_v32 }
 0xe3d   :  { %v853_v39 = vmul.f32 %v851_v34, %v837_v36 }
 0xe42   :  { %v1283_v35 = vpop.eup %1282 }
 0xe43   :  { %v852_v38 = vadd.f32 1.0, %v1283_v35 }
 0xe45   :  { %v854_v40 = vmul.f32 %v852_v38, %v838_v37  ;;  %v1327_v38 = vmov 0  }
 0xe46   :  { %1203 = vset.pattern.permute.xlu2 %v1327_v38  ;;  %1204 = vset.pattern.permute.xlu0 %v1327_v38 }
 0xe47   :  { %v863_v41 = vpack.c.bf16 %v854_v40, %v853_v39  ;;  %v1225_v39 = vld [vmem:[%s1632_s3 + $0x14] ss:$0 sm:$0xff] }
 0xe49   :  { %1152 = vmatmul.msk.bf16.vlgmr.msrb.gmra.mxu3 %vm451_vm15, %v863_v41 }
 0xecc   :  { %v902_v0 = vpop.f32.mrf.mxu3 }
 0xecd   :  { %v903_v42 = vadd.f32 %v1220_v11, %v902_v0 }
 0xecf   :  { %v907_v43 = vadd.f32 %v903_v42, %v799_v13 }
 0xed1   :  { %v911_v12 = vsel %vm23_vm0, %v907_v43, 0.0 }
 0xed2   :  { %912 = vadd.xlane.f32.xlu0 %v911_v12 }
 0xed4   :  { %v904_v44 = vpop.f32.mrf.mxu3 }
 0xed5   :  { %v905_v45 = vadd.f32 %v1220_v11, %v904_v44 }
 0xed7   :  { %v908_v5 = vadd.f32 %v905_v45, %v800_v14 }
 0xed9   :  { %v914_v46 = vsel %vm23_vm0, %v908_v5, 0.0 }
 0xeda   :  { %915 = vadd.xlane.f32.xlu1 %v914_v46 }
 0xf45   :  { %v913_v47 = vpop.xlane.xlu0 %912 }
 0xf46   :  { %v917_v48 = vmul.f32 %v913_v47, %v1362_v10 }
 0xf48   :  { %v919_v51 = vsub.f32 %v907_v43, %v917_v48 }
 0xf4a   :  { %v921_v52 = vmul.f32 %v919_v51, %v919_v51 }
 0xf4c   :  { %v923_v53 = vsel %vm23_vm0, %v921_v52, 0.0 }
 0xf4d   :  { %v916_v54 = vpop.xlane.xlu1 %915  ;;  %924 = vadd.xlane.f32.xlu1 %v923_v53 }
 0xf4e   :  { %v918_v55 = vmul.f32 %v916_v54, %v1362_v10  ;;  %v1035_v54 = vlaneseq }
 0xf50   :  { %v920_v56 = vsub.f32 %v908_v5, %v918_v55  ;;  %v1036_v55 = vand.u32 127, %v1035_v54 }
 0xf52   :  { %v922_v57 = vmul.f32 %v920_v56, %v920_v56 }
 0xf54   :  { %v926_v58 = vsel %vm23_vm0, %v922_v57, 0.0 }
 0xf55   :  { %927 = vadd.xlane.f32.xlu2 %v926_v58 }
 0xfc0   :  { %v925_v59 = vpop.xlane.xlu1 %924 }
 0xfc1   :  { %v929_v60 = vmul.f32 %v925_v59, %v1362_v10 }
 0xfc3   :  { %v931_v62 = vadd.f32 1e-12, %v929_v60 }
 0xfc5   :  { %1284 = vrsqrt.f32 %v931_v62  ;;  %vm939_vm14 = vweird.f32 %v931_v62 }
 0xfc8   :  { %v928_v1 = vpop.xlane.xlu2 %927 }
 0xfc9   :  { %v930_v2 = vmul.f32 %v928_v1, %v1362_v10  ;;  %v1221_v10 = vld [vmem:[%s1632_s3 + $0x10] ss:$0 sm:$0xff]  ;;  %s1328_s3 = smov [#allocation2]  }
 0xfca   :  { %s1046_s6 = sshll.u32 %s1328_s3, 4  ;;  %s1047_s6 = int_to_ptr.vmem [resolvable:$true] %s1046_s6 }
 0xfcb   :  { %v1285_v3 = vpop.eup %1284  ;;  %v932_v4 = vadd.f32 1e-12, %v930_v2 }
 0xfcc   :  { %v934_v6 = vmul.f32 %v1285_v3, %v931_v62  ;;  %vm940_vm13 = vweird.f32 %v1285_v3 }
 0xfcd   :  { %1286 = vrsqrt.f32 %v932_v4  ;;  %vm941_vm15 = vmor %vm939_vm14, %vm940_vm13  ;;  %vm949_vm2 = vweird.f32 %v932_v4 }
 0xfce   :  { %v935_v7 = vmul.f32 %v1285_v3, %v934_v6 }
 0xfd0   :  { %v936_v8 = vmul.f32 0.5, %v935_v7 }
 0xfd2   :  { %v937_v9 = vsub.f32 1.5, %v936_v8 }
 0xfd3   :  { %v1287_v13 = vpop.eup %1286 }
 0xfd4   :  { %v944_v14 = vmul.f32 %v1287_v13, %v932_v4  ;;  %v938_v15 = vmul.f32 %v1285_v3, %v937_v9  ;;  %vm950_vm1 = vweird.f32 %v1287_v13 }
 0xfd5   :  { %vm951_vm3 = vmor %vm949_vm2, %vm950_vm1 }
 0xfd6   :  { %v945_v16 = vmul.f32 %v1287_v13, %v944_v14  ;;  %v942_v18 = vsel %vm941_vm15, %v1285_v3, %v938_v15 }
 0xfd7   :  { %v953_v21 = vmul.f32 %v942_v18, %v919_v51 }
 0xfd8   :  { %v946_v17 = vmul.f32 0.5, %v945_v16 }
 0xfd9   :  { %v956_v24 = vmul.f32 %v1221_v10, %v953_v21 }
 0xfda   :  { %v947_v19 = vsub.f32 1.5, %v946_v17 }
 0xfdb   :  { %v959_v26 = vadd.f32 %v1222_v23, %v956_v24 }
 0xfdc   :  { %v948_v20 = vmul.f32 %v1287_v13, %v947_v19 }
 0xfde   :  { %v952_v22 = vsel %vm951_vm3, %v1287_v13, %v948_v20 }
 0xfdf   :  { %v954_v49 = vmul.f32 %v952_v22, %v920_v56 }
 0xfe1   :  { %v957_v25 = vmul.f32 %v1221_v10, %v954_v49 }
 0xfe3   :  { %v960_v50 = vadd.f32 %v1222_v23, %v957_v25 }
 0xfe5   :  { %v962_v27 = vrot.slane %v960_v50, 7 }
 0xfe7   :  { %v965_v28 = vsel %vm964_vm4, %v959_v26, %v962_v27 }
 0xfe8   :  { %v970_v29 = vpack.c.bf16 %v965_v28, %v965_v28 }
 0xfea   :  { %1161 = vmatmul.msk.bf16.vlgmr.msra.gmra.mxu2 %vm23_vm0, %v970_v29 }
0x106d   :  { %v997_v31 = vpop.f32.mrf.mxu2 }
0x106e   :  { %v998_v32 = vadd.f32 %v1223_v30, %v997_v31 }
0x1070   :  { %1288 = vtanh.f32 %v998_v32 }
0x1075   :  { %v999_v34 = vpop.f32.mrf.mxu2 }
0x1076   :  { %v1289_v35 = vpop.eup %1288 }
0x1077   :  { %v1004_v36 = vmul.f32 %v1289_v35, %v1224_v33 }
0x1079   :  { %v1006_v37 = vsel %vm1005_vm5, %v1004_v36, 0.0 }
0x107a   :  { %1007 = vadd.xlane.f32.xlu0 %v1006_v37 }
0x10ed   :  { %v1008_v40 = vpop.xlane.xlu0 %1007 }
0x10ee   :  { %v1011_v41 = vadd.f32 %v1225_v39, %v1008_v40 }
0x10f0   :  { %v1012_v11 = vsub.f32 0.0, %v1011_v41 }
0x10f2   :  { %v1013_v0 = vmul.f32 1.442695, %v1012_v11 }
0x10f4   :  { %1290 = vpow2.f32 %v1013_v0 }
0x10fa   :  { %v1291_v42 = vpop.eup %1290 }
0x10fb   :  { %v1015_v43 = vadd.f32 1.0, %v1291_v42 }
0x10fd   :  { %1292 = vrcp.f32 %v1015_v43  ;;  %v1027_v5 = vand.u32 2147483648, %v1015_v43  ;;  %v1025_v47 = vand.u32 2147483647, %v1015_v43  ;;  %vm1021_vm6 = vweird.f32 %v1015_v43 }
0x10ff   :  { %v1028_v51 = vor.u32 1.1754944e-38, %v1027_v5  ;;  %vm1026_vm8 = vcmp.eq.f32.partialorder %v1025_v47, 8.507059e+37 }
0x1103   :  { %v1293_v12 = vpop.eup %1292 }
0x1104   :  { %v1017_v44 = vmul.f32 %v1293_v12, %v1015_v43  ;;  %vm1022_vm0 = vweird.f32 %v1293_v12 }
0x1105   :  { %vm1023_vm7 = vmor %vm1021_vm6, %vm1022_vm0 }
0x1106   :  { %v1018_v45 = vsub.f32 1.0, %v1017_v44 }
0x1108   :  { %v1019_v46 = vmul.f32 %v1293_v12, %v1018_v45 }
0x110a   :  { %v1020_v48 = vadd.f32 %v1293_v12, %v1019_v46 }
0x110c   :  { %v1024_v52 = vsel %vm1023_vm7, %v1293_v12, %v1020_v48 }
0x110d   :  { %v1029_v53 = vsel %vm1026_vm8, %v1028_v51, %v1024_v52 }
0x110e   :  { %1033 = vperm.xlu2 %1203, %v1029_v53  }
0x1168   :  { %v1034_v56 = vpop.permute.xlu2 %1033 }
0x1169   :  { %v1037_v57 = vperm.slane %v1034_v56, %v1036_v55 }
0x116b   :  { %1040 = vst.msk [vmem:[#allocation2] sm:$0x1] %vm1039_vm9, %v1037_v57 }
0x116c   :  { %1051 = dma.vmem_to_hbm [thread:$0]  %s1047_s6, 16, %s1049_s10, [#allocation3]  }
0x116d   :  { %1318 = dma.done.wait [#allocation3], 16  }
0x116e   :  { %1319 = vsyncadd [#allocation3], 4294967280 }
0x116f   :  { %1056 = vsyncpa [#allocation3], 1 }

</bundles_post_ra>
